<compile_context>
chip_gen: v5e
topology: v5e:2x2
jax: 0.10.0
libtpu: 0.0.40
codegen_flags: <defaults>
</compile_context>

<pallas_src>
import functools

import jax
import jax.numpy as jnp
from jax.experimental import pallas as pl
from jax.experimental.pallas import tpu as pltpu

# ---- small BERT config (a miniature bert-base-uncased) -----------------------
VOCAB = 100
MAX_POS = 64
TYPE_VOCAB = 2
HIDDEN = 32
HEADS = 2
HEAD_DIM = HIDDEN // HEADS
LAYERS = 2
INTER = 64
OUT_DIM = 16
LN_EPS = 1e-12

BATCH = 2
SEQ = 8

_PARAMS_PER_LAYER = 12


# ------------------------------ in-kernel helpers ------------------------------
def _erf(x):
    """Exact-to-f32 erf via Abramowitz & Stegun 7.1.26 (|err| < 1.5e-7).

    Uses only basic VPU/EUP ops so it lowers cleanly in Mosaic (no erf primitive)."""
    a1, a2, a3, a4, a5 = 0.254829592, -0.284496736, 1.421413741, -1.453152027, 1.061405429
    p = 0.3275911
    ax = jnp.abs(x)
    t = 1.0 / (1.0 + p * ax)
    poly = ((((a5 * t + a4) * t + a3) * t + a2) * t + a1) * t
    y = 1.0 - poly * jnp.exp(-ax * ax)
    return jnp.where(x < 0, -y, y)


def _gelu(x):
    # Exact (erf) GELU — matches HuggingFace BertModel default activation.
    return 0.5 * x * (1.0 + _erf(x * 0.7071067811865476))


def _layernorm(x, g, b):
    mean = jnp.mean(x, axis=-1, keepdims=True)
    var = jnp.mean((x - mean) * (x - mean), axis=-1, keepdims=True)
    return (x - mean) * jax.lax.rsqrt(var + LN_EPS) * g + b


# ------------------------------ the fused kernel -------------------------------
def _bert_fused_kernel(emb_ref, mask_ref, eln_g_ref, eln_b_ref,
                       outw_ref, outb_ref, *rest, batch, seq):
    """Whole BertEncoder forward in one kernel.

    emb_ref  : [B*S, HIDDEN]  f32   (word + position + token-type embeddings)
    mask_ref : [B, 1, S]      f32   (1 = keep, 0 = pad)
    rest     : LAYERS * 12 weight refs, then the output ref [B, OUT_DIM].
    """
    o_ref = rest[-1]
    layer_refs = rest[:-1]

    scale = 1.0 / float(HEAD_DIM) ** 0.5
    # Extended additive attention mask: (1 - mask) * -10000 (HF semantics).
    amask = (1.0 - mask_ref[...]) * -10000.0                       # [B, 1, S]

    # Embedding LayerNorm (no fake zero residual).
    h = _layernorm(emb_ref[...], eln_g_ref[...], eln_b_ref[...])   # [B*S, H]

    for layer in range(LAYERS):
        (qkv_w, qkv_b, ao_w, ao_b, ln1_g, ln1_b,
         i_w, i_b, o_w, o_b, ln2_g, ln2_b) = layer_refs[
            layer * _PARAMS_PER_LAYER:(layer + 1) * _PARAMS_PER_LAYER]

        # Fused Q/K/V projection: one [B*S, H] @ [H, 3H] matmul.
        qkv = jnp.dot(h, qkv_w[...], preferred_element_type=jnp.float32) + qkv_b[...]

        # Attention, one head at a time (HEADS=2, unrolled); everything stays in vregs.
        ctx_heads = []
        for hd in range(HEADS):
            q = qkv[:, hd * HEAD_DIM:(hd + 1) * HEAD_DIM]
            k = qkv[:, HIDDEN + hd * HEAD_DIM:HIDDEN + (hd + 1) * HEAD_DIM]
            v = qkv[:, 2 * HIDDEN + hd * HEAD_DIM:2 * HIDDEN + (hd + 1) * HEAD_DIM]
            q = q.reshape(batch, seq, HEAD_DIM)
            k = k.reshape(batch, seq, HEAD_DIM)
            v = v.reshape(batch, seq, HEAD_DIM)

            s = jnp.einsum("bqd,bkd->bqk", q, k,
                           preferred_element_type=jnp.float32)     # [B, S, S]
            s = s * scale + amask
            s = s - jnp.max(s, axis=-1, keepdims=True)
            p = jnp.exp(s)
            # Divide-free softmax: reciprocal runs on the otherwise-idle EUP slot.
            p = p * pl.reciprocal(jnp.sum(p, axis=-1, keepdims=True), approx=True)
            c = jnp.einsum("bqk,bkd->bqd", p, v,
                           preferred_element_type=jnp.float32)     # [B, S, D]
            ctx_heads.append(c.reshape(batch * seq, HEAD_DIM))
        ctx = jnp.concatenate(ctx_heads, axis=-1)                  # [B*S, H]

        # Attention output projection + residual LayerNorm.
        attn_out = jnp.dot(ctx, ao_w[...], preferred_element_type=jnp.float32) + ao_b[...]
        h = _layernorm(attn_out + h, ln1_g[...], ln1_b[...])

        # FFN (exact-erf GELU) + residual LayerNorm.
        inter = _gelu(jnp.dot(h, i_w[...], preferred_element_type=jnp.float32) + i_b[...])
        ffn = jnp.dot(inter, o_w[...], preferred_element_type=jnp.float32) + o_b[...]
        h = _layernorm(ffn + h, ln2_g[...], ln2_b[...])

    # CLS pooling: row b*seq is token 0 of batch b.
    cls = jnp.concatenate([h[b * seq:b * seq + 1, :] for b in range(batch)], axis=0)
    # Dropout(p=0.1) is identity at inference time.
    out = jnp.dot(cls, outw_ref[...], preferred_element_type=jnp.float32) + outb_ref[...]
    o_ref[...] = out.astype(o_ref.dtype)
    # TODO(synk): for v7x megacore, add a batch grid axis with
    # dimension_semantics=("parallel",) so the two TensorCores split the batch.


# --------------------------------- the model -----------------------------------
def bert_encoder_forward(x, params):
    """Equivalent of BertEncoder.forward (inference mode, dropout = identity)."""
    ids = x[:, 0, :]                                   # [B, S] token ids
    attn = x[:, 1, :].astype(jnp.float32)              # [B, S] attention mask
    B, S = ids.shape

    # Embedding gather = plain-JAX glue; token_type_ids = 0.
    tok = jnp.take(params["word_emb"], ids, axis=0)    # [B, S, H]
    pos = params["pos_emb"][:S][None, :, :]            # [1, S, H]
    typ = params["type_emb"][0][None, None, :]         # [1, 1, H]
    emb = (tok + pos + typ).reshape(B * S, HIDDEN)
    mask = attn.reshape(B, 1, S)

    flat = [
        emb, mask,
        params["emb_ln_g"].reshape(1, HIDDEN), params["emb_ln_b"].reshape(1, HIDDEN),
        params["out_w"], params["out_b"].reshape(1, OUT_DIM),
    ]
    for p in params["layers"]:
        qkv_w = jnp.concatenate([p["q_w"], p["k_w"], p["v_w"]], axis=1)          # [H, 3H]
        qkv_b = jnp.concatenate([p["q_b"], p["k_b"], p["v_b"]]).reshape(1, 3 * HIDDEN)
        flat += [
            qkv_w, qkv_b,
            p["ao_w"], p["ao_b"].reshape(1, HIDDEN),
            p["ln1_g"].reshape(1, HIDDEN), p["ln1_b"].reshape(1, HIDDEN),
            p["i_w"], p["i_b"].reshape(1, INTER),
            p["o_w"], p["o_b"].reshape(1, HIDDEN),
            p["ln2_g"].reshape(1, HIDDEN), p["ln2_b"].reshape(1, HIDDEN),
        ]

    # Single invocation (no grid): every input is a whole-array VMEM-resident block;
    # only the final [B, OUT_DIM] tensor is written back to HBM.
    return pl.pallas_call(
        functools.partial(_bert_fused_kernel, batch=B, seq=S),
        out_shape=jax.ShapeDtypeStruct((B, OUT_DIM), jnp.float32),
        compiler_params=pltpu.CompilerParams(vmem_limit_bytes=32 * 1024 * 1024),
    )(*flat)


# ------------------------------ deterministic init -----------------------------
def init_params(key):
    keys = iter(jax.random.split(key, 8 + LAYERS * 8))

    def nrm(shape):
        return 0.02 * jax.random.normal(next(keys), shape, jnp.float32)

    params = {
        "word_emb": nrm((VOCAB, HIDDEN)),
        "pos_emb": nrm((MAX_POS, HIDDEN)),
        "type_emb": nrm((TYPE_VOCAB, HIDDEN)),
        "emb_ln_g": jnp.ones((HIDDEN,), jnp.float32),
        "emb_ln_b": jnp.zeros((HIDDEN,), jnp.float32),
        "out_w": nrm((HIDDEN, OUT_DIM)),
        "out_b": jnp.zeros((OUT_DIM,), jnp.float32),
        "layers": [],
    }
    for _ in range(LAYERS):
        params["layers"].append({
            "q_w": nrm((HIDDEN, HIDDEN)), "q_b": jnp.zeros((HIDDEN,), jnp.float32),
            "k_w": nrm((HIDDEN, HIDDEN)), "k_b": jnp.zeros((HIDDEN,), jnp.float32),
            "v_w": nrm((HIDDEN, HIDDEN)), "v_b": jnp.zeros((HIDDEN,), jnp.float32),
            "ao_w": nrm((HIDDEN, HIDDEN)), "ao_b": jnp.zeros((HIDDEN,), jnp.float32),
            "ln1_g": jnp.ones((HIDDEN,), jnp.float32),
            "ln1_b": jnp.zeros((HIDDEN,), jnp.float32),
            "i_w": nrm((HIDDEN, INTER)), "i_b": jnp.zeros((INTER,), jnp.float32),
            "o_w": nrm((INTER, HIDDEN)), "o_b": jnp.zeros((HIDDEN,), jnp.float32),
            "ln2_g": jnp.ones((HIDDEN,), jnp.float32),
            "ln2_b": jnp.zeros((HIDDEN,), jnp.float32),
        })
    return params


if __name__ == "__main__":
    key = jax.random.PRNGKey(0)
    pkey, ikey = jax.random.split(key)
    params = init_params(pkey)

    ids = jax.random.randint(ikey, (BATCH, SEQ), 0, VOCAB, dtype=jnp.int32)
    attn_mask = jnp.ones((BATCH, SEQ), jnp.int32).at[1, 6:].set(0)  # pad tail of sample 1
    x = jnp.stack([ids, attn_mask], axis=1)                          # [B, 2, S] int32

    fwd = jax.jit(bert_encoder_forward)
    y = fwd(x, params)
    jax.block_until_ready(y)
    assert y.shape == (BATCH, OUT_DIM) and y.dtype == jnp.float32
    assert bool(jnp.all(jnp.isfinite(y)))
    print("KERNEL_OK")
</pallas_src>

<mosaic_0001>
module attributes {stable_mosaic.version = 11 : i64} {
  func.func @_bert_fused_kernel(%arg0: memref<16x32xf32, #tpu.memory_space<vmem>>, %arg1: memref<2x1x8xf32, #tpu.memory_space<vmem>>, %arg2: memref<1x32xf32, #tpu.memory_space<vmem>>, %arg3: memref<1x32xf32, #tpu.memory_space<vmem>>, %arg4: memref<32x16xf32, #tpu.memory_space<vmem>>, %arg5: memref<1x16xf32, #tpu.memory_space<vmem>>, %arg6: memref<32x96xf32, #tpu.memory_space<vmem>>, %arg7: memref<1x96xf32, #tpu.memory_space<vmem>>, %arg8: memref<32x32xf32, #tpu.memory_space<vmem>>, %arg9: memref<1x32xf32, #tpu.memory_space<vmem>>, %arg10: memref<1x32xf32, #tpu.memory_space<vmem>>, %arg11: memref<1x32xf32, #tpu.memory_space<vmem>>, %arg12: memref<32x64xf32, #tpu.memory_space<vmem>>, %arg13: memref<1x64xf32, #tpu.memory_space<vmem>>, %arg14: memref<64x32xf32, #tpu.memory_space<vmem>>, %arg15: memref<1x32xf32, #tpu.memory_space<vmem>>, %arg16: memref<1x32xf32, #tpu.memory_space<vmem>>, %arg17: memref<1x32xf32, #tpu.memory_space<vmem>>, %arg18: memref<32x96xf32, #tpu.memory_space<vmem>>, %arg19: memref<1x96xf32, #tpu.memory_space<vmem>>, %arg20: memref<32x32xf32, #tpu.memory_space<vmem>>, %arg21: memref<1x32xf32, #tpu.memory_space<vmem>>, %arg22: memref<1x32xf32, #tpu.memory_space<vmem>>, %arg23: memref<1x32xf32, #tpu.memory_space<vmem>>, %arg24: memref<32x64xf32, #tpu.memory_space<vmem>>, %arg25: memref<1x64xf32, #tpu.memory_space<vmem>>, %arg26: memref<64x32xf32, #tpu.memory_space<vmem>>, %arg27: memref<1x32xf32, #tpu.memory_space<vmem>>, %arg28: memref<1x32xf32, #tpu.memory_space<vmem>>, %arg29: memref<1x32xf32, #tpu.memory_space<vmem>>, %arg30: memref<2x16xf32, #tpu.memory_space<vmem>>) attributes {dimension_semantics = [], scalar_prefetch = 0 : i64, scratch_operands = 0 : i64, tpu.core_type = #tpu.core_type<tc>} {
    %c0 = arith.constant 0 : index
    %c0_0 = arith.constant 0 : index
    %c0_1 = arith.constant 0 : index
    %0 = vector.load %arg1[%c0, %c0_0, %c0_1] : memref<2x1x8xf32, #tpu.memory_space<vmem>>, vector<2x1x8xf32>
    %cst = arith.constant 1.000000e+00 : f32
    %1 = vector.broadcast %cst : f32 to vector<2x1x8xf32>
    %2 = arith.subf %1, %0 : vector<2x1x8xf32>
    %cst_2 = arith.constant -1.000000e+04 : f32
    %3 = vector.broadcast %cst_2 : f32 to vector<2x1x8xf32>
    %4 = arith.mulf %2, %3 : vector<2x1x8xf32>
    %c0_3 = arith.constant 0 : index
    %c0_4 = arith.constant 0 : index
    %5 = vector.load %arg0[%c0_3, %c0_4] : memref<16x32xf32, #tpu.memory_space<vmem>>, vector<16x32xf32>
    %c0_5 = arith.constant 0 : index
    %c0_6 = arith.constant 0 : index
    %6 = vector.load %arg2[%c0_5, %c0_6] : memref<1x32xf32, #tpu.memory_space<vmem>>, vector<1x32xf32>
    %c0_7 = arith.constant 0 : index
    %c0_8 = arith.constant 0 : index
    %7 = vector.load %arg3[%c0_7, %c0_8] : memref<1x32xf32, #tpu.memory_space<vmem>>, vector<1x32xf32>
    %cst_9 = arith.constant dense<0.000000e+00> : vector<16xf32>
    %8 = vector.multi_reduction <add>, %5, %cst_9 [1] : vector<16x32xf32> to vector<16xf32>
    %9 = vector.shape_cast %8 : vector<16xf32> to vector<16x1xf32>
    %cst_10 = arith.constant 3.200000e+01 : f32
    %10 = vector.broadcast %cst_10 : f32 to vector<16x1xf32>
    %11 = arith.divf %9, %10 : vector<16x1xf32>
    %12 = vector.broadcast %11 : vector<16x1xf32> to vector<16x32xf32>
    %13 = arith.subf %5, %12 : vector<16x32xf32>
    %14 = vector.broadcast %11 : vector<16x1xf32> to vector<16x32xf32>
    %15 = arith.subf %5, %14 : vector<16x32xf32>
    %16 = arith.mulf %13, %15 : vector<16x32xf32>
    %cst_11 = arith.constant dense<0.000000e+00> : vector<16xf32>
    %17 = vector.multi_reduction <add>, %16, %cst_11 [1] : vector<16x32xf32> to vector<16xf32>
    %18 = vector.shape_cast %17 : vector<16xf32> to vector<16x1xf32>
    %cst_12 = arith.constant 3.200000e+01 : f32
    %19 = vector.broadcast %cst_12 : f32 to vector<16x1xf32>
    %20 = arith.divf %18, %19 : vector<16x1xf32>
    %21 = vector.broadcast %11 : vector<16x1xf32> to vector<16x32xf32>
    %22 = arith.subf %5, %21 : vector<16x32xf32>
    %cst_13 = arith.constant 9.99999996E-13 : f32
    %23 = vector.broadcast %cst_13 : f32 to vector<16x1xf32>
    %24 = arith.addf %20, %23 : vector<16x1xf32>
    %25 = math.rsqrt %24 : vector<16x1xf32>
    %26 = vector.broadcast %25 : vector<16x1xf32> to vector<16x32xf32>
    %27 = arith.mulf %22, %26 : vector<16x32xf32>
    %28 = vector.broadcast %6 : vector<1x32xf32> to vector<16x32xf32>
    %29 = arith.mulf %27, %28 : vector<16x32xf32>
    %30 = vector.broadcast %7 : vector<1x32xf32> to vector<16x32xf32>
    %31 = arith.addf %29, %30 : vector<16x32xf32>
    %c0_14 = arith.constant 0 : index
    %c0_15 = arith.constant 0 : index
    %32 = vector.load %arg6[%c0_14, %c0_15] : memref<32x96xf32, #tpu.memory_space<vmem>>, vector<32x96xf32>
    %cst_16 = arith.constant dense<0.000000e+00> : vector<16x96xf32>
    %33 = tpu.matmul %31, %32, %cst_16 {dimension_numbers = #tpu.dot_dimension_numbers<[1], [0], [0], [1], [0, 0, 1, 1], [], []>} : vector<16x32xf32>, vector<32x96xf32>, vector<16x96xf32> -> vector<16x96xf32>
    %c0_17 = arith.constant 0 : index
    %c0_18 = arith.constant 0 : index
    %34 = vector.load %arg7[%c0_17, %c0_18] : memref<1x96xf32, #tpu.memory_space<vmem>>, vector<1x96xf32>
    %35 = vector.broadcast %34 : vector<1x96xf32> to vector<16x96xf32>
    %36 = arith.addf %33, %35 : vector<16x96xf32>
    %37 = vector.extract_strided_slice %36 {offsets = [0, 0], sizes = [16, 16], strides = [1, 1]} : vector<16x96xf32> to vector<16x16xf32>
    %38 = vector.extract_strided_slice %36 {offsets = [0, 32], sizes = [16, 16], strides = [1, 1]} : vector<16x96xf32> to vector<16x16xf32>
    %39 = vector.extract_strided_slice %36 {offsets = [0, 64], sizes = [16, 16], strides = [1, 1]} : vector<16x96xf32> to vector<16x16xf32>
    %40 = vector.shape_cast %37 : vector<16x16xf32> to vector<2x8x16xf32>
    %41 = vector.shape_cast %38 : vector<16x16xf32> to vector<2x8x16xf32>
    %42 = vector.shape_cast %39 : vector<16x16xf32> to vector<2x8x16xf32>
    "tpu.trace_start"() <{level = 10 : i32, message = "bqd,bkd->bqk"}> : () -> ()
    %cst_19 = arith.constant dense<0.000000e+00> : vector<2x8x8xf32>
    %43 = tpu.matmul %40, %41, %cst_19 {dimension_numbers = #tpu.dot_dimension_numbers<[2], [2], [1], [1], [0, 0, 0, 1, 1, 1], [0], [0]>} : vector<2x8x16xf32>, vector<2x8x16xf32>, vector<2x8x8xf32> -> vector<2x8x8xf32>
    "tpu.trace_stop"() : () -> ()
    %cst_20 = arith.constant 2.500000e-01 : f32
    %44 = vector.broadcast %cst_20 : f32 to vector<2x8x8xf32>
    %45 = arith.mulf %43, %44 : vector<2x8x8xf32>
    %46 = vector.broadcast %4 : vector<2x1x8xf32> to vector<2x8x8xf32>
    %47 = arith.addf %45, %46 : vector<2x8x8xf32>
    %cst_21 = arith.constant dense<0xFF800000> : vector<2x8xf32>
    %48 = vector.multi_reduction <maximumf>, %47, %cst_21 [2] : vector<2x8x8xf32> to vector<2x8xf32>
    %49 = vector.shape_cast %48 : vector<2x8xf32> to vector<2x8x1xf32>
    %50 = vector.broadcast %49 : vector<2x8x1xf32> to vector<2x8x8xf32>
    %51 = arith.subf %47, %50 : vector<2x8x8xf32>
    %52 = math.exp %51 : vector<2x8x8xf32>
    %cst_22 = arith.constant dense<0.000000e+00> : vector<2x8xf32>
    %53 = vector.multi_reduction <add>, %52, %cst_22 [2] : vector<2x8x8xf32> to vector<2x8xf32>
    %54 = vector.shape_cast %53 : vector<2x8xf32> to vector<2x8x1xf32>
    %55 = tpu.reciprocal %54 {approx = true} : vector<2x8x1xf32> -> vector<2x8x1xf32>
    %56 = vector.broadcast %55 : vector<2x8x1xf32> to vector<2x8x8xf32>
    %57 = arith.mulf %52, %56 : vector<2x8x8xf32>
    "tpu.trace_start"() <{level = 10 : i32, message = "bqk,bkd->bqd"}> : () -> ()
    %cst_23 = arith.constant dense<0.000000e+00> : vector<2x8x16xf32>
    %58 = tpu.matmul %57, %42, %cst_23 {dimension_numbers = #tpu.dot_dimension_numbers<[2], [1], [1], [2], [0, 0, 0, 1, 1, 2], [0], [0]>} : vector<2x8x8xf32>, vector<2x8x16xf32>, vector<2x8x16xf32> -> vector<2x8x16xf32>
    "tpu.trace_stop"() : () -> ()
    %59 = vector.shape_cast %58 : vector<2x8x16xf32> to vector<16x16xf32>
    %60 = vector.extract_strided_slice %36 {offsets = [0, 16], sizes = [16, 16], strides = [1, 1]} : vector<16x96xf32> to vector<16x16xf32>
    %61 = vector.extract_strided_slice %36 {offsets = [0, 48], sizes = [16, 16], strides = [1, 1]} : vector<16x96xf32> to vector<16x16xf32>
    %62 = vector.extract_strided_slice %36 {offsets = [0, 80], sizes = [16, 16], strides = [1, 1]} : vector<16x96xf32> to vector<16x16xf32>
    %63 = vector.shape_cast %60 : vector<16x16xf32> to vector<2x8x16xf32>
    %64 = vector.shape_cast %61 : vector<16x16xf32> to vector<2x8x16xf32>
    %65 = vector.shape_cast %62 : vector<16x16xf32> to vector<2x8x16xf32>
    "tpu.trace_start"() <{level = 10 : i32, message = "bqd,bkd->bqk"}> : () -> ()
    %cst_24 = arith.constant dense<0.000000e+00> : vector<2x8x8xf32>
    %66 = tpu.matmul %63, %64, %cst_24 {dimension_numbers = #tpu.dot_dimension_numbers<[2], [2], [1], [1], [0, 0, 0, 1, 1, 1], [0], [0]>} : vector<2x8x16xf32>, vector<2x8x16xf32>, vector<2x8x8xf32> -> vector<2x8x8xf32>
    "tpu.trace_stop"() : () -> ()
    %cst_25 = arith.constant 2.500000e-01 : f32
    %67 = vector.broadcast %cst_25 : f32 to vector<2x8x8xf32>
    %68 = arith.mulf %66, %67 : vector<2x8x8xf32>
    %69 = vector.broadcast %4 : vector<2x1x8xf32> to vector<2x8x8xf32>
    %70 = arith.addf %68, %69 : vector<2x8x8xf32>
    %cst_26 = arith.constant dense<0xFF800000> : vector<2x8xf32>
    %71 = vector.multi_reduction <maximumf>, %70, %cst_26 [2] : vector<2x8x8xf32> to vector<2x8xf32>
    %72 = vector.shape_cast %71 : vector<2x8xf32> to vector<2x8x1xf32>
    %73 = vector.broadcast %72 : vector<2x8x1xf32> to vector<2x8x8xf32>
    %74 = arith.subf %70, %73 : vector<2x8x8xf32>
    %75 = math.exp %74 : vector<2x8x8xf32>
    %cst_27 = arith.constant dense<0.000000e+00> : vector<2x8xf32>
    %76 = vector.multi_reduction <add>, %75, %cst_27 [2] : vector<2x8x8xf32> to vector<2x8xf32>
    %77 = vector.shape_cast %76 : vector<2x8xf32> to vector<2x8x1xf32>
    %78 = tpu.reciprocal %77 {approx = true} : vector<2x8x1xf32> -> vector<2x8x1xf32>
    %79 = vector.broadcast %78 : vector<2x8x1xf32> to vector<2x8x8xf32>
    %80 = arith.mulf %75, %79 : vector<2x8x8xf32>
    "tpu.trace_start"() <{level = 10 : i32, message = "bqk,bkd->bqd"}> : () -> ()
    %cst_28 = arith.constant dense<0.000000e+00> : vector<2x8x16xf32>
    %81 = tpu.matmul %80, %65, %cst_28 {dimension_numbers = #tpu.dot_dimension_numbers<[2], [1], [1], [2], [0, 0, 0, 1, 1, 2], [0], [0]>} : vector<2x8x8xf32>, vector<2x8x16xf32>, vector<2x8x16xf32> -> vector<2x8x16xf32>
    "tpu.trace_stop"() : () -> ()
    %82 = vector.shape_cast %81 : vector<2x8x16xf32> to vector<16x16xf32>
    %83 = tpu.concatenate %59, %82 in 1 : vector<16x16xf32>, vector<16x16xf32> -> vector<16x32xf32>
    %c0_29 = arith.constant 0 : index
    %c0_30 = arith.constant 0 : index
    %84 = vector.load %arg8[%c0_29, %c0_30] : memref<32x32xf32, #tpu.memory_space<vmem>>, vector<32x32xf32>
    %cst_31 = arith.constant dense<0.000000e+00> : vector<16x32xf32>
    %85 = tpu.matmul %83, %84, %cst_31 {dimension_numbers = #tpu.dot_dimension_numbers<[1], [0], [0], [1], [0, 0, 1, 1], [], []>} : vector<16x32xf32>, vector<32x32xf32>, vector<16x32xf32> -> vector<16x32xf32>
    %c0_32 = arith.constant 0 : index
    %c0_33 = arith.constant 0 : index
    %86 = vector.load %arg9[%c0_32, %c0_33] : memref<1x32xf32, #tpu.memory_space<vmem>>, vector<1x32xf32>
    %87 = vector.broadcast %86 : vector<1x32xf32> to vector<16x32xf32>
    %88 = arith.addf %85, %87 : vector<16x32xf32>
    %89 = arith.addf %88, %31 : vector<16x32xf32>
    %c0_34 = arith.constant 0 : index
    %c0_35 = arith.constant 0 : index
    %90 = vector.load %arg10[%c0_34, %c0_35] : memref<1x32xf32, #tpu.memory_space<vmem>>, vector<1x32xf32>
    %c0_36 = arith.constant 0 : index
    %c0_37 = arith.constant 0 : index
    %91 = vector.load %arg11[%c0_36, %c0_37] : memref<1x32xf32, #tpu.memory_space<vmem>>, vector<1x32xf32>
    %cst_38 = arith.constant dense<0.000000e+00> : vector<16xf32>
    %92 = vector.multi_reduction <add>, %89, %cst_38 [1] : vector<16x32xf32> to vector<16xf32>
    %93 = vector.shape_cast %92 : vector<16xf32> to vector<16x1xf32>
    %cst_39 = arith.constant 3.200000e+01 : f32
    %94 = vector.broadcast %cst_39 : f32 to vector<16x1xf32>
    %95 = arith.divf %93, %94 : vector<16x1xf32>
    %96 = vector.broadcast %95 : vector<16x1xf32> to vector<16x32xf32>
    %97 = arith.subf %89, %96 : vector<16x32xf32>
    %98 = vector.broadcast %95 : vector<16x1xf32> to vector<16x32xf32>
    %99 = arith.subf %89, %98 : vector<16x32xf32>
    %100 = arith.mulf %97, %99 : vector<16x32xf32>
    %cst_40 = arith.constant dense<0.000000e+00> : vector<16xf32>
    %101 = vector.multi_reduction <add>, %100, %cst_40 [1] : vector<16x32xf32> to vector<16xf32>
    %102 = vector.shape_cast %101 : vector<16xf32> to vector<16x1xf32>
    %cst_41 = arith.constant 3.200000e+01 : f32
    %103 = vector.broadcast %cst_41 : f32 to vector<16x1xf32>
    %104 = arith.divf %102, %103 : vector<16x1xf32>
    %105 = vector.broadcast %95 : vector<16x1xf32> to vector<16x32xf32>
    %106 = arith.subf %89, %105 : vector<16x32xf32>
    %cst_42 = arith.constant 9.99999996E-13 : f32
    %107 = vector.broadcast %cst_42 : f32 to vector<16x1xf32>
    %108 = arith.addf %104, %107 : vector<16x1xf32>
    %109 = math.rsqrt %108 : vector<16x1xf32>
    %110 = vector.broadcast %109 : vector<16x1xf32> to vector<16x32xf32>
    %111 = arith.mulf %106, %110 : vector<16x32xf32>
    %112 = vector.broadcast %90 : vector<1x32xf32> to vector<16x32xf32>
    %113 = arith.mulf %111, %112 : vector<16x32xf32>
    %114 = vector.broadcast %91 : vector<1x32xf32> to vector<16x32xf32>
    %115 = arith.addf %113, %114 : vector<16x32xf32>
    %c0_43 = arith.constant 0 : index
    %c0_44 = arith.constant 0 : index
    %116 = vector.load %arg12[%c0_43, %c0_44] : memref<32x64xf32, #tpu.memory_space<vmem>>, vector<32x64xf32>
    %cst_45 = arith.constant dense<0.000000e+00> : vector<16x64xf32>
    %117 = tpu.matmul %115, %116, %cst_45 {dimension_numbers = #tpu.dot_dimension_numbers<[1], [0], [0], [1], [0, 0, 1, 1], [], []>} : vector<16x32xf32>, vector<32x64xf32>, vector<16x64xf32> -> vector<16x64xf32>
    %c0_46 = arith.constant 0 : index
    %c0_47 = arith.constant 0 : index
    %118 = vector.load %arg13[%c0_46, %c0_47] : memref<1x64xf32, #tpu.memory_space<vmem>>, vector<1x64xf32>
    %119 = vector.broadcast %118 : vector<1x64xf32> to vector<16x64xf32>
    %120 = arith.addf %117, %119 : vector<16x64xf32>
    %cst_48 = arith.constant 5.000000e-01 : f32
    %121 = vector.broadcast %cst_48 : f32 to vector<16x64xf32>
    %122 = arith.mulf %121, %120 : vector<16x64xf32>
    %cst_49 = arith.constant 0.707106769 : f32
    %123 = vector.broadcast %cst_49 : f32 to vector<16x64xf32>
    %124 = arith.mulf %120, %123 : vector<16x64xf32>
    %125 = math.absf %124 : vector<16x64xf32>
    %cst_50 = arith.constant 0.327591091 : f32
    %126 = vector.broadcast %cst_50 : f32 to vector<16x64xf32>
    %127 = arith.mulf %126, %125 : vector<16x64xf32>
    %cst_51 = arith.constant 1.000000e+00 : f32
    %128 = vector.broadcast %cst_51 : f32 to vector<16x64xf32>
    %129 = arith.addf %128, %127 : vector<16x64xf32>
    %cst_52 = arith.constant 1.000000e+00 : f32
    %130 = vector.broadcast %cst_52 : f32 to vector<16x64xf32>
    %131 = arith.divf %130, %129 : vector<16x64xf32>
    %cst_53 = arith.constant 1.06140542 : f32
    %132 = vector.broadcast %cst_53 : f32 to vector<16x64xf32>
    %133 = arith.mulf %132, %131 : vector<16x64xf32>
    %cst_54 = arith.constant -1.45315206 : f32
    %134 = vector.broadcast %cst_54 : f32 to vector<16x64xf32>
    %135 = arith.addf %133, %134 : vector<16x64xf32>
    %136 = arith.mulf %135, %131 : vector<16x64xf32>
    %cst_55 = arith.constant 1.42141378 : f32
    %137 = vector.broadcast %cst_55 : f32 to vector<16x64xf32>
    %138 = arith.addf %136, %137 : vector<16x64xf32>
    %139 = arith.mulf %138, %131 : vector<16x64xf32>
    %cst_56 = arith.constant -0.284496725 : f32
    %140 = vector.broadcast %cst_56 : f32 to vector<16x64xf32>
    %141 = arith.addf %139, %140 : vector<16x64xf32>
    %142 = arith.mulf %141, %131 : vector<16x64xf32>
    %cst_57 = arith.constant 0.254829586 : f32
    %143 = vector.broadcast %cst_57 : f32 to vector<16x64xf32>
    %144 = arith.addf %142, %143 : vector<16x64xf32>
    %145 = arith.mulf %144, %131 : vector<16x64xf32>
    %cst_58 = arith.constant 0.000000e+00 : f32
    %146 = vector.broadcast %cst_58 : f32 to vector<16x64xf32>
    %147 = arith.subf %146, %125 : vector<16x64xf32>
    %148 = arith.mulf %147, %125 : vector<16x64xf32>
    %149 = math.exp %148 : vector<16x64xf32>
    %150 = arith.mulf %145, %149 : vector<16x64xf32>
    %cst_59 = arith.constant 1.000000e+00 : f32
    %151 = vector.broadcast %cst_59 : f32 to vector<16x64xf32>
    %152 = arith.subf %151, %150 : vector<16x64xf32>
    %cst_60 = arith.constant 0.000000e+00 : f32
    %153 = vector.broadcast %cst_60 : f32 to vector<16x64xf32>
    %154 = arith.cmpf olt, %124, %153 : vector<16x64xf32>
    %cst_61 = arith.constant 0.000000e+00 : f32
    %155 = vector.broadcast %cst_61 : f32 to vector<16x64xf32>
    %156 = arith.subf %155, %152 : vector<16x64xf32>
    %157 = arith.select %154, %156, %152 : vector<16x64xi1>, vector<16x64xf32>
    %cst_62 = arith.constant 1.000000e+00 : f32
    %158 = vector.broadcast %cst_62 : f32 to vector<16x64xf32>
    %159 = arith.addf %158, %157 : vector<16x64xf32>
    %160 = arith.mulf %122, %159 : vector<16x64xf32>
    %c0_63 = arith.constant 0 : index
    %c0_64 = arith.constant 0 : index
    %161 = vector.load %arg14[%c0_63, %c0_64] : memref<64x32xf32, #tpu.memory_space<vmem>>, vector<64x32xf32>
    %cst_65 = arith.constant dense<0.000000e+00> : vector<16x32xf32>
    %162 = tpu.matmul %160, %161, %cst_65 {dimension_numbers = #tpu.dot_dimension_numbers<[1], [0], [0], [1], [0, 0, 1, 1], [], []>} : vector<16x64xf32>, vector<64x32xf32>, vector<16x32xf32> -> vector<16x32xf32>
    %c0_66 = arith.constant 0 : index
    %c0_67 = arith.constant 0 : index
    %163 = vector.load %arg15[%c0_66, %c0_67] : memref<1x32xf32, #tpu.memory_space<vmem>>, vector<1x32xf32>
    %164 = vector.broadcast %163 : vector<1x32xf32> to vector<16x32xf32>
    %165 = arith.addf %162, %164 : vector<16x32xf32>
    %166 = arith.addf %165, %115 : vector<16x32xf32>
    %c0_68 = arith.constant 0 : index
    %c0_69 = arith.constant 0 : index
    %167 = vector.load %arg16[%c0_68, %c0_69] : memref<1x32xf32, #tpu.memory_space<vmem>>, vector<1x32xf32>
    %c0_70 = arith.constant 0 : index
    %c0_71 = arith.constant 0 : index
    %168 = vector.load %arg17[%c0_70, %c0_71] : memref<1x32xf32, #tpu.memory_space<vmem>>, vector<1x32xf32>
    %cst_72 = arith.constant dense<0.000000e+00> : vector<16xf32>
    %169 = vector.multi_reduction <add>, %166, %cst_72 [1] : vector<16x32xf32> to vector<16xf32>
    %170 = vector.shape_cast %169 : vector<16xf32> to vector<16x1xf32>
    %cst_73 = arith.constant 3.200000e+01 : f32
    %171 = vector.broadcast %cst_73 : f32 to vector<16x1xf32>
    %172 = arith.divf %170, %171 : vector<16x1xf32>
    %173 = vector.broadcast %172 : vector<16x1xf32> to vector<16x32xf32>
    %174 = arith.subf %166, %173 : vector<16x32xf32>
    %175 = vector.broadcast %172 : vector<16x1xf32> to vector<16x32xf32>
    %176 = arith.subf %166, %175 : vector<16x32xf32>
    %177 = arith.mulf %174, %176 : vector<16x32xf32>
    %cst_74 = arith.constant dense<0.000000e+00> : vector<16xf32>
    %178 = vector.multi_reduction <add>, %177, %cst_74 [1] : vector<16x32xf32> to vector<16xf32>
    %179 = vector.shape_cast %178 : vector<16xf32> to vector<16x1xf32>
    %cst_75 = arith.constant 3.200000e+01 : f32
    %180 = vector.broadcast %cst_75 : f32 to vector<16x1xf32>
    %181 = arith.divf %179, %180 : vector<16x1xf32>
    %182 = vector.broadcast %172 : vector<16x1xf32> to vector<16x32xf32>
    %183 = arith.subf %166, %182 : vector<16x32xf32>
    %cst_76 = arith.constant 9.99999996E-13 : f32
    %184 = vector.broadcast %cst_76 : f32 to vector<16x1xf32>
    %185 = arith.addf %181, %184 : vector<16x1xf32>
    %186 = math.rsqrt %185 : vector<16x1xf32>
    %187 = vector.broadcast %186 : vector<16x1xf32> to vector<16x32xf32>
    %188 = arith.mulf %183, %187 : vector<16x32xf32>
    %189 = vector.broadcast %167 : vector<1x32xf32> to vector<16x32xf32>
    %190 = arith.mulf %188, %189 : vector<16x32xf32>
    %191 = vector.broadcast %168 : vector<1x32xf32> to vector<16x32xf32>
    %192 = arith.addf %190, %191 : vector<16x32xf32>
    %c0_77 = arith.constant 0 : index
    %c0_78 = arith.constant 0 : index
    %193 = vector.load %arg18[%c0_77, %c0_78] : memref<32x96xf32, #tpu.memory_space<vmem>>, vector<32x96xf32>
    %cst_79 = arith.constant dense<0.000000e+00> : vector<16x96xf32>
    %194 = tpu.matmul %192, %193, %cst_79 {dimension_numbers = #tpu.dot_dimension_numbers<[1], [0], [0], [1], [0, 0, 1, 1], [], []>} : vector<16x32xf32>, vector<32x96xf32>, vector<16x96xf32> -> vector<16x96xf32>
    %c0_80 = arith.constant 0 : index
    %c0_81 = arith.constant 0 : index
    %195 = vector.load %arg19[%c0_80, %c0_81] : memref<1x96xf32, #tpu.memory_space<vmem>>, vector<1x96xf32>
    %196 = vector.broadcast %195 : vector<1x96xf32> to vector<16x96xf32>
    %197 = arith.addf %194, %196 : vector<16x96xf32>
    %198 = vector.extract_strided_slice %197 {offsets = [0, 0], sizes = [16, 16], strides = [1, 1]} : vector<16x96xf32> to vector<16x16xf32>
    %199 = vector.extract_strided_slice %197 {offsets = [0, 32], sizes = [16, 16], strides = [1, 1]} : vector<16x96xf32> to vector<16x16xf32>
    %200 = vector.extract_strided_slice %197 {offsets = [0, 64], sizes = [16, 16], strides = [1, 1]} : vector<16x96xf32> to vector<16x16xf32>
    %201 = vector.shape_cast %198 : vector<16x16xf32> to vector<2x8x16xf32>
    %202 = vector.shape_cast %199 : vector<16x16xf32> to vector<2x8x16xf32>
    %203 = vector.shape_cast %200 : vector<16x16xf32> to vector<2x8x16xf32>
    "tpu.trace_start"() <{level = 10 : i32, message = "bqd,bkd->bqk"}> : () -> ()
    %cst_82 = arith.constant dense<0.000000e+00> : vector<2x8x8xf32>
    %204 = tpu.matmul %201, %202, %cst_82 {dimension_numbers = #tpu.dot_dimension_numbers<[2], [2], [1], [1], [0, 0, 0, 1, 1, 1], [0], [0]>} : vector<2x8x16xf32>, vector<2x8x16xf32>, vector<2x8x8xf32> -> vector<2x8x8xf32>
    "tpu.trace_stop"() : () -> ()
    %cst_83 = arith.constant 2.500000e-01 : f32
    %205 = vector.broadcast %cst_83 : f32 to vector<2x8x8xf32>
    %206 = arith.mulf %204, %205 : vector<2x8x8xf32>
    %207 = vector.broadcast %4 : vector<2x1x8xf32> to vector<2x8x8xf32>
    %208 = arith.addf %206, %207 : vector<2x8x8xf32>
    %cst_84 = arith.constant dense<0xFF800000> : vector<2x8xf32>
    %209 = vector.multi_reduction <maximumf>, %208, %cst_84 [2] : vector<2x8x8xf32> to vector<2x8xf32>
    %210 = vector.shape_cast %209 : vector<2x8xf32> to vector<2x8x1xf32>
    %211 = vector.broadcast %210 : vector<2x8x1xf32> to vector<2x8x8xf32>
    %212 = arith.subf %208, %211 : vector<2x8x8xf32>
    %213 = math.exp %212 : vector<2x8x8xf32>
    %cst_85 = arith.constant dense<0.000000e+00> : vector<2x8xf32>
    %214 = vector.multi_reduction <add>, %213, %cst_85 [2] : vector<2x8x8xf32> to vector<2x8xf32>
    %215 = vector.shape_cast %214 : vector<2x8xf32> to vector<2x8x1xf32>
    %216 = tpu.reciprocal %215 {approx = true} : vector<2x8x1xf32> -> vector<2x8x1xf32>
    %217 = vector.broadcast %216 : vector<2x8x1xf32> to vector<2x8x8xf32>
    %218 = arith.mulf %213, %217 : vector<2x8x8xf32>
    "tpu.trace_start"() <{level = 10 : i32, message = "bqk,bkd->bqd"}> : () -> ()
    %cst_86 = arith.constant dense<0.000000e+00> : vector<2x8x16xf32>
    %219 = tpu.matmul %218, %203, %cst_86 {dimension_numbers = #tpu.dot_dimension_numbers<[2], [1], [1], [2], [0, 0, 0, 1, 1, 2], [0], [0]>} : vector<2x8x8xf32>, vector<2x8x16xf32>, vector<2x8x16xf32> -> vector<2x8x16xf32>
    "tpu.trace_stop"() : () -> ()
    %220 = vector.shape_cast %219 : vector<2x8x16xf32> to vector<16x16xf32>
    %221 = vector.extract_strided_slice %197 {offsets = [0, 16], sizes = [16, 16], strides = [1, 1]} : vector<16x96xf32> to vector<16x16xf32>
    %222 = vector.extract_strided_slice %197 {offsets = [0, 48], sizes = [16, 16], strides = [1, 1]} : vector<16x96xf32> to vector<16x16xf32>
    %223 = vector.extract_strided_slice %197 {offsets = [0, 80], sizes = [16, 16], strides = [1, 1]} : vector<16x96xf32> to vector<16x16xf32>
    %224 = vector.shape_cast %221 : vector<16x16xf32> to vector<2x8x16xf32>
    %225 = vector.shape_cast %222 : vector<16x16xf32> to vector<2x8x16xf32>
    %226 = vector.shape_cast %223 : vector<16x16xf32> to vector<2x8x16xf32>
    "tpu.trace_start"() <{level = 10 : i32, message = "bqd,bkd->bqk"}> : () -> ()
    %cst_87 = arith.constant dense<0.000000e+00> : vector<2x8x8xf32>
    %227 = tpu.matmul %224, %225, %cst_87 {dimension_numbers = #tpu.dot_dimension_numbers<[2], [2], [1], [1], [0, 0, 0, 1, 1, 1], [0], [0]>} : vector<2x8x16xf32>, vector<2x8x16xf32>, vector<2x8x8xf32> -> vector<2x8x8xf32>
    "tpu.trace_stop"() : () -> ()
    %cst_88 = arith.constant 2.500000e-01 : f32
    %228 = vector.broadcast %cst_88 : f32 to vector<2x8x8xf32>
    %229 = arith.mulf %227, %228 : vector<2x8x8xf32>
    %230 = vector.broadcast %4 : vector<2x1x8xf32> to vector<2x8x8xf32>
    %231 = arith.addf %229, %230 : vector<2x8x8xf32>
    %cst_89 = arith.constant dense<0xFF800000> : vector<2x8xf32>
    %232 = vector.multi_reduction <maximumf>, %231, %cst_89 [2] : vector<2x8x8xf32> to vector<2x8xf32>
    %233 = vector.shape_cast %232 : vector<2x8xf32> to vector<2x8x1xf32>
    %234 = vector.broadcast %233 : vector<2x8x1xf32> to vector<2x8x8xf32>
    %235 = arith.subf %231, %234 : vector<2x8x8xf32>
    %236 = math.exp %235 : vector<2x8x8xf32>
    %cst_90 = arith.constant dense<0.000000e+00> : vector<2x8xf32>
    %237 = vector.multi_reduction <add>, %236, %cst_90 [2] : vector<2x8x8xf32> to vector<2x8xf32>
    %238 = vector.shape_cast %237 : vector<2x8xf32> to vector<2x8x1xf32>
    %239 = tpu.reciprocal %238 {approx = true} : vector<2x8x1xf32> -> vector<2x8x1xf32>
    %240 = vector.broadcast %239 : vector<2x8x1xf32> to vector<2x8x8xf32>
    %241 = arith.mulf %236, %240 : vector<2x8x8xf32>
    "tpu.trace_start"() <{level = 10 : i32, message = "bqk,bkd->bqd"}> : () -> ()
    %cst_91 = arith.constant dense<0.000000e+00> : vector<2x8x16xf32>
    %242 = tpu.matmul %241, %226, %cst_91 {dimension_numbers = #tpu.dot_dimension_numbers<[2], [1], [1], [2], [0, 0, 0, 1, 1, 2], [0], [0]>} : vector<2x8x8xf32>, vector<2x8x16xf32>, vector<2x8x16xf32> -> vector<2x8x16xf32>
    "tpu.trace_stop"() : () -> ()
    %243 = vector.shape_cast %242 : vector<2x8x16xf32> to vector<16x16xf32>
    %244 = tpu.concatenate %220, %243 in 1 : vector<16x16xf32>, vector<16x16xf32> -> vector<16x32xf32>
    %c0_92 = arith.constant 0 : index
    %c0_93 = arith.constant 0 : index
    %245 = vector.load %arg20[%c0_92, %c0_93] : memref<32x32xf32, #tpu.memory_space<vmem>>, vector<32x32xf32>
    %cst_94 = arith.constant dense<0.000000e+00> : vector<16x32xf32>
    %246 = tpu.matmul %244, %245, %cst_94 {dimension_numbers = #tpu.dot_dimension_numbers<[1], [0], [0], [1], [0, 0, 1, 1], [], []>} : vector<16x32xf32>, vector<32x32xf32>, vector<16x32xf32> -> vector<16x32xf32>
    %c0_95 = arith.constant 0 : index
    %c0_96 = arith.constant 0 : index
    %247 = vector.load %arg21[%c0_95, %c0_96] : memref<1x32xf32, #tpu.memory_space<vmem>>, vector<1x32xf32>
    %248 = vector.broadcast %247 : vector<1x32xf32> to vector<16x32xf32>
    %249 = arith.addf %246, %248 : vector<16x32xf32>
    %250 = arith.addf %249, %192 : vector<16x32xf32>
    %c0_97 = arith.constant 0 : index
    %c0_98 = arith.constant 0 : index
    %251 = vector.load %arg22[%c0_97, %c0_98] : memref<1x32xf32, #tpu.memory_space<vmem>>, vector<1x32xf32>
    %c0_99 = arith.constant 0 : index
    %c0_100 = arith.constant 0 : index
    %252 = vector.load %arg23[%c0_99, %c0_100] : memref<1x32xf32, #tpu.memory_space<vmem>>, vector<1x32xf32>
    %cst_101 = arith.constant dense<0.000000e+00> : vector<16xf32>
    %253 = vector.multi_reduction <add>, %250, %cst_101 [1] : vector<16x32xf32> to vector<16xf32>
    %254 = vector.shape_cast %253 : vector<16xf32> to vector<16x1xf32>
    %cst_102 = arith.constant 3.200000e+01 : f32
    %255 = vector.broadcast %cst_102 : f32 to vector<16x1xf32>
    %256 = arith.divf %254, %255 : vector<16x1xf32>
    %257 = vector.broadcast %256 : vector<16x1xf32> to vector<16x32xf32>
    %258 = arith.subf %250, %257 : vector<16x32xf32>
    %259 = vector.broadcast %256 : vector<16x1xf32> to vector<16x32xf32>
    %260 = arith.subf %250, %259 : vector<16x32xf32>
    %261 = arith.mulf %258, %260 : vector<16x32xf32>
    %cst_103 = arith.constant dense<0.000000e+00> : vector<16xf32>
    %262 = vector.multi_reduction <add>, %261, %cst_103 [1] : vector<16x32xf32> to vector<16xf32>
    %263 = vector.shape_cast %262 : vector<16xf32> to vector<16x1xf32>
    %cst_104 = arith.constant 3.200000e+01 : f32
    %264 = vector.broadcast %cst_104 : f32 to vector<16x1xf32>
    %265 = arith.divf %263, %264 : vector<16x1xf32>
    %266 = vector.broadcast %256 : vector<16x1xf32> to vector<16x32xf32>
    %267 = arith.subf %250, %266 : vector<16x32xf32>
    %cst_105 = arith.constant 9.99999996E-13 : f32
    %268 = vector.broadcast %cst_105 : f32 to vector<16x1xf32>
    %269 = arith.addf %265, %268 : vector<16x1xf32>
    %270 = math.rsqrt %269 : vector<16x1xf32>
    %271 = vector.broadcast %270 : vector<16x1xf32> to vector<16x32xf32>
    %272 = arith.mulf %267, %271 : vector<16x32xf32>
    %273 = vector.broadcast %251 : vector<1x32xf32> to vector<16x32xf32>
    %274 = arith.mulf %272, %273 : vector<16x32xf32>
    %275 = vector.broadcast %252 : vector<1x32xf32> to vector<16x32xf32>
    %276 = arith.addf %274, %275 : vector<16x32xf32>
    %c0_106 = arith.constant 0 : index
    %c0_107 = arith.constant 0 : index
    %277 = vector.load %arg24[%c0_106, %c0_107] : memref<32x64xf32, #tpu.memory_space<vmem>>, vector<32x64xf32>
    %cst_108 = arith.constant dense<0.000000e+00> : vector<16x64xf32>
    %278 = tpu.matmul %276, %277, %cst_108 {dimension_numbers = #tpu.dot_dimension_numbers<[1], [0], [0], [1], [0, 0, 1, 1], [], []>} : vector<16x32xf32>, vector<32x64xf32>, vector<16x64xf32> -> vector<16x64xf32>
    %c0_109 = arith.constant 0 : index
    %c0_110 = arith.constant 0 : index
    %279 = vector.load %arg25[%c0_109, %c0_110] : memref<1x64xf32, #tpu.memory_space<vmem>>, vector<1x64xf32>
    %280 = vector.broadcast %279 : vector<1x64xf32> to vector<16x64xf32>
    %281 = arith.addf %278, %280 : vector<16x64xf32>
    %cst_111 = arith.constant 5.000000e-01 : f32
    %282 = vector.broadcast %cst_111 : f32 to vector<16x64xf32>
    %283 = arith.mulf %282, %281 : vector<16x64xf32>
    %cst_112 = arith.constant 0.707106769 : f32
    %284 = vector.broadcast %cst_112 : f32 to vector<16x64xf32>
    %285 = arith.mulf %281, %284 : vector<16x64xf32>
    %286 = math.absf %285 : vector<16x64xf32>
    %cst_113 = arith.constant 0.327591091 : f32
    %287 = vector.broadcast %cst_113 : f32 to vector<16x64xf32>
    %288 = arith.mulf %287, %286 : vector<16x64xf32>
    %cst_114 = arith.constant 1.000000e+00 : f32
    %289 = vector.broadcast %cst_114 : f32 to vector<16x64xf32>
    %290 = arith.addf %289, %288 : vector<16x64xf32>
    %cst_115 = arith.constant 1.000000e+00 : f32
    %291 = vector.broadcast %cst_115 : f32 to vector<16x64xf32>
    %292 = arith.divf %291, %290 : vector<16x64xf32>
    %cst_116 = arith.constant 1.06140542 : f32
    %293 = vector.broadcast %cst_116 : f32 to vector<16x64xf32>
    %294 = arith.mulf %293, %292 : vector<16x64xf32>
    %cst_117 = arith.constant -1.45315206 : f32
    %295 = vector.broadcast %cst_117 : f32 to vector<16x64xf32>
    %296 = arith.addf %294, %295 : vector<16x64xf32>
    %297 = arith.mulf %296, %292 : vector<16x64xf32>
    %cst_118 = arith.constant 1.42141378 : f32
    %298 = vector.broadcast %cst_118 : f32 to vector<16x64xf32>
    %299 = arith.addf %297, %298 : vector<16x64xf32>
    %300 = arith.mulf %299, %292 : vector<16x64xf32>
    %cst_119 = arith.constant -0.284496725 : f32
    %301 = vector.broadcast %cst_119 : f32 to vector<16x64xf32>
    %302 = arith.addf %300, %301 : vector<16x64xf32>
    %303 = arith.mulf %302, %292 : vector<16x64xf32>
    %cst_120 = arith.constant 0.254829586 : f32
    %304 = vector.broadcast %cst_120 : f32 to vector<16x64xf32>
    %305 = arith.addf %303, %304 : vector<16x64xf32>
    %306 = arith.mulf %305, %292 : vector<16x64xf32>
    %cst_121 = arith.constant 0.000000e+00 : f32
    %307 = vector.broadcast %cst_121 : f32 to vector<16x64xf32>
    %308 = arith.subf %307, %286 : vector<16x64xf32>
    %309 = arith.mulf %308, %286 : vector<16x64xf32>
    %310 = math.exp %309 : vector<16x64xf32>
    %311 = arith.mulf %306, %310 : vector<16x64xf32>
    %cst_122 = arith.constant 1.000000e+00 : f32
    %312 = vector.broadcast %cst_122 : f32 to vector<16x64xf32>
    %313 = arith.subf %312, %311 : vector<16x64xf32>
    %cst_123 = arith.constant 0.000000e+00 : f32
    %314 = vector.broadcast %cst_123 : f32 to vector<16x64xf32>
    %315 = arith.cmpf olt, %285, %314 : vector<16x64xf32>
    %cst_124 = arith.constant 0.000000e+00 : f32
    %316 = vector.broadcast %cst_124 : f32 to vector<16x64xf32>
    %317 = arith.subf %316, %313 : vector<16x64xf32>
    %318 = arith.select %315, %317, %313 : vector<16x64xi1>, vector<16x64xf32>
    %cst_125 = arith.constant 1.000000e+00 : f32
    %319 = vector.broadcast %cst_125 : f32 to vector<16x64xf32>
    %320 = arith.addf %319, %318 : vector<16x64xf32>
    %321 = arith.mulf %283, %320 : vector<16x64xf32>
    %c0_126 = arith.constant 0 : index
    %c0_127 = arith.constant 0 : index
    %322 = vector.load %arg26[%c0_126, %c0_127] : memref<64x32xf32, #tpu.memory_space<vmem>>, vector<64x32xf32>
    %cst_128 = arith.constant dense<0.000000e+00> : vector<16x32xf32>
    %323 = tpu.matmul %321, %322, %cst_128 {dimension_numbers = #tpu.dot_dimension_numbers<[1], [0], [0], [1], [0, 0, 1, 1], [], []>} : vector<16x64xf32>, vector<64x32xf32>, vector<16x32xf32> -> vector<16x32xf32>
    %c0_129 = arith.constant 0 : index
    %c0_130 = arith.constant 0 : index
    %324 = vector.load %arg27[%c0_129, %c0_130] : memref<1x32xf32, #tpu.memory_space<vmem>>, vector<1x32xf32>
    %325 = vector.broadcast %324 : vector<1x32xf32> to vector<16x32xf32>
    %326 = arith.addf %323, %325 : vector<16x32xf32>
    %327 = arith.addf %326, %276 : vector<16x32xf32>
    %c0_131 = arith.constant 0 : index
    %c0_132 = arith.constant 0 : index
    %328 = vector.load %arg28[%c0_131, %c0_132] : memref<1x32xf32, #tpu.memory_space<vmem>>, vector<1x32xf32>
    %c0_133 = arith.constant 0 : index
    %c0_134 = arith.constant 0 : index
    %329 = vector.load %arg29[%c0_133, %c0_134] : memref<1x32xf32, #tpu.memory_space<vmem>>, vector<1x32xf32>
    %cst_135 = arith.constant dense<0.000000e+00> : vector<16xf32>
    %330 = vector.multi_reduction <add>, %327, %cst_135 [1] : vector<16x32xf32> to vector<16xf32>
    %331 = vector.shape_cast %330 : vector<16xf32> to vector<16x1xf32>
    %cst_136 = arith.constant 3.200000e+01 : f32
    %332 = vector.broadcast %cst_136 : f32 to vector<16x1xf32>
    %333 = arith.divf %331, %332 : vector<16x1xf32>
    %334 = vector.broadcast %333 : vector<16x1xf32> to vector<16x32xf32>
    %335 = arith.subf %327, %334 : vector<16x32xf32>
    %336 = vector.broadcast %333 : vector<16x1xf32> to vector<16x32xf32>
    %337 = arith.subf %327, %336 : vector<16x32xf32>
    %338 = arith.mulf %335, %337 : vector<16x32xf32>
    %cst_137 = arith.constant dense<0.000000e+00> : vector<16xf32>
    %339 = vector.multi_reduction <add>, %338, %cst_137 [1] : vector<16x32xf32> to vector<16xf32>
    %340 = vector.shape_cast %339 : vector<16xf32> to vector<16x1xf32>
    %cst_138 = arith.constant 3.200000e+01 : f32
    %341 = vector.broadcast %cst_138 : f32 to vector<16x1xf32>
    %342 = arith.divf %340, %341 : vector<16x1xf32>
    %343 = vector.broadcast %333 : vector<16x1xf32> to vector<16x32xf32>
    %344 = arith.subf %327, %343 : vector<16x32xf32>
    %cst_139 = arith.constant 9.99999996E-13 : f32
    %345 = vector.broadcast %cst_139 : f32 to vector<16x1xf32>
    %346 = arith.addf %342, %345 : vector<16x1xf32>
    %347 = math.rsqrt %346 : vector<16x1xf32>
    %348 = vector.broadcast %347 : vector<16x1xf32> to vector<16x32xf32>
    %349 = arith.mulf %344, %348 : vector<16x32xf32>
    %350 = vector.broadcast %328 : vector<1x32xf32> to vector<16x32xf32>
    %351 = arith.mulf %349, %350 : vector<16x32xf32>
    %352 = vector.broadcast %329 : vector<1x32xf32> to vector<16x32xf32>
    %353 = arith.addf %351, %352 : vector<16x32xf32>
    %354 = vector.extract_strided_slice %353 {offsets = [0, 0], sizes = [1, 32], strides = [1, 1]} : vector<16x32xf32> to vector<1x32xf32>
    %355 = vector.extract_strided_slice %353 {offsets = [8, 0], sizes = [1, 32], strides = [1, 1]} : vector<16x32xf32> to vector<1x32xf32>
    %356 = tpu.concatenate %354, %355 in 0 : vector<1x32xf32>, vector<1x32xf32> -> vector<2x32xf32>
    %c0_140 = arith.constant 0 : index
    %c0_141 = arith.constant 0 : index
    %357 = vector.load %arg4[%c0_140, %c0_141] : memref<32x16xf32, #tpu.memory_space<vmem>>, vector<32x16xf32>
    %cst_142 = arith.constant dense<0.000000e+00> : vector<2x16xf32>
    %358 = tpu.matmul %356, %357, %cst_142 {dimension_numbers = #tpu.dot_dimension_numbers<[1], [0], [0], [1], [0, 0, 1, 1], [], []>} : vector<2x32xf32>, vector<32x16xf32>, vector<2x16xf32> -> vector<2x16xf32>
    %c0_143 = arith.constant 0 : index
    %c0_144 = arith.constant 0 : index
    %359 = vector.load %arg5[%c0_143, %c0_144] : memref<1x16xf32, #tpu.memory_space<vmem>>, vector<1x16xf32>
    %360 = vector.broadcast %359 : vector<1x16xf32> to vector<2x16xf32>
    %361 = arith.addf %358, %360 : vector<2x16xf32>
    %c0_145 = arith.constant 0 : index
    %c0_146 = arith.constant 0 : index
    %362 = vector.load %arg30[%c0_145, %c0_146] : memref<2x16xf32, #tpu.memory_space<vmem>>, vector<2x16xf32>
    tpu.vector_store %arg30[%c0_145, %c0_146], %361 {strides = array<i32>} : memref<2x16xf32, #tpu.memory_space<vmem>>, vector<2x16xf32>,
    return
  }
}

</mosaic_0001>

<bundles_post_ra>
// kernel: bert_encoder_forward.1
= control target key start
LH: loop header
LB: loop body
LE: loop exit
PB: predicated region body
PF: predicated region fallthrough
CT: control target
= control target key end

     0   :  { %s1749_s6 = smov 1   ;;  %s1750_s10 = smov 2   ;;  %s2247_s0 = inlined_call_operand.smem [shape: u32[31], index: -1, kind: input, shape index: {}] }
   0x1   :  { %s1795_s5 = sld [smem:[%s2247_s0]]   ;;  %s1751_s14 = smov 3  }
   0x2   :  { %s1800_s9 = sld [smem:[%s2247_s0 + %s1749_s6]]   ;;  %s1752_s18 = smov 4  }
   0x3   :  { %s1805_s13 = sld [smem:[%s2247_s0 + %s1750_s10]]   ;;  %s1753_s22 = smov 5  }
   0x4   :  { %s1810_s17 = sld [smem:[%s2247_s0 + %s1751_s14]]   ;;  %s1754_s26 = smov 6  }
   0x5   :  { %s1815_s21 = sld [smem:[%s2247_s0 + %s1752_s18]]   ;;  %s1755_s30 = smov 7  }
   0x6   :  { %s1820_s25 = sld [smem:[%s2247_s0 + %s1753_s22]]   ;;  %s1756_s4 = smov 8  }
   0x7   :  { %s1825_s29 = sld [smem:[%s2247_s0 + %s1754_s26]]   ;;  %s1757_s10 = smov 9  }
   0x8   :  { %s1830_s3 = sld [smem:[%s2247_s0 + %s1755_s30]]   ;;  %s1758_s15 = smov 10  }
   0x9   :  { %s1835_s8 = sld [smem:[%s2247_s0 + %s1756_s4]]   ;;  %s1759_s20 = smov 11  }
   0xa   :  { %s1840_s14 = sld [smem:[%s2247_s0 + %s1757_s10]]   ;;  %s1760_s26 = smov 12  }
   0xb   :  { %2253 = sst [smem:[#allocation5_spill]] %s1815_s21  ;;  %s1761_s1 = smov 13  }
   0xc   :  { %2254 = sst [smem:[#allocation6_spill]] %s1820_s25  ;;  %s1762_s7 = smov 14  }
   0xd   :  { %s1845_s19 = sld [smem:[%s2247_s0 + %s1758_s15]]   ;;  %s1763_s15 = smov 15  }
   0xe   :  { %s1850_s24 = sld [smem:[%s2247_s0 + %s1759_s20]]   ;;  %s1764_s22 = smov 16  }
   0xf   :  { %s1855_s30 = sld [smem:[%s2247_s0 + %s1760_s26]]   ;;  %s1765_s28 = smov 17  }
  0x10   :  { %s1860_s6 = sld [smem:[%s2247_s0 + %s1761_s1]]  }
  0x11   :  { %s1865_s12 = sld [smem:[%s2247_s0 + %s1762_s7]]   ;;  %s1766_s7 = smov 18  }
  0x12   :  { %s1870_s20 = sld [smem:[%s2247_s0 + %s1763_s15]]   ;;  %s1767_s15 = smov 19  }
  0x13   :  { %s1875_s27 = sld [smem:[%s2247_s0 + %s1764_s22]]   ;;  %s1768_s22 = smov 20  }
  0x14   :  { %s1880_s4 = sld [smem:[%s2247_s0 + %s1765_s28]]   ;;  %s1769_s28 = smov 21  }
  0x15   :  { %s1885_s25 = sld [smem:[%s2247_s0 + %s1766_s7]]   ;;  %s1770_s7 = smov 22  }
  0x16   :  { %s1890_s21 = sld [smem:[%s2247_s0 + %s1767_s15]]   ;;  %s1771_s15 = smov 23  }
  0x19   :  { %2255 = sst [smem:[#allocation7_spill]] %s1875_s27 }
  0x1a   :  { %2256 = sst [smem:[#allocation8_spill]] %s1880_s4 }
  0x1b   :  { %2257 = sst [smem:[#allocation9_spill]] %s1885_s25 }
  0x1c   :  { %2258 = sst [smem:[#allocation10_spill]] %s1890_s21 }
  0x1d   :  { %s1895_s27 = sld [smem:[%s2247_s0 + %s1768_s22]]   ;;  %s1772_s22 = smov 24  }
  0x1e   :  { %s1900_s4 = sld [smem:[%s2247_s0 + %s1769_s28]]   ;;  %s1773_s28 = smov 25  }
  0x1f   :  { %s1905_s25 = sld [smem:[%s2247_s0 + %s1770_s7]]   ;;  %s1774_s7 = smov 26  }
  0x20   :  { %s1910_s21 = sld [smem:[%s2247_s0 + %s1771_s15]]   ;;  %s1775_s15 = smov 27  }
  0x23   :  { %2259 = sst [smem:[#allocation11_spill]] %s1895_s27 }
  0x24   :  { %2260 = sst [smem:[#allocation12_spill]] %s1900_s4 }
  0x25   :  { %2261 = sst [smem:[#allocation13_spill]] %s1905_s25 }
  0x26   :  { %2262 = sst [smem:[#allocation14_spill]] %s1910_s21 }
  0x27   :  { %s1915_s27 = sld [smem:[%s2247_s0 + %s1772_s22]]   ;;  %s1776_s22 = smov 28  }
  0x28   :  { %s1920_s4 = sld [smem:[%s2247_s0 + %s1773_s28]]   ;;  %s1777_s28 = smov 29  }
  0x29   :  { %s1925_s25 = sld [smem:[%s2247_s0 + %s1774_s7]]   ;;  %s1778_s7 = smov 30  }
  0x2a   :  { %s1930_s21 = sld [smem:[%s2247_s0 + %s1775_s15]]  }
  0x2d   :  { %2263 = sst [smem:[#allocation15_spill]] %s1915_s27 }
  0x2e   :  { %2264 = sst [smem:[#allocation16_spill]] %s1920_s4 }
  0x2f   :  { %2265 = sst [smem:[#allocation17_spill]] %s1925_s25 }
  0x30   :  { %s1935_s27 = sld [smem:[%s2247_s0 + %s1776_s22]]  }
  0x31   :  { %s1940_s4 = sld [smem:[%s2247_s0 + %s1777_s28]]  }
  0x32   :  { %s1945_s25 = sld [smem:[%s2247_s0 + %s1778_s7]]  }
  0x33   :  { %v133_v0 = vld [vmem:[%s1795_s5] sm:$0xff]  ;;  %vm137_vm0 = vcmask 261120   ;;  %v134_v2 = vld [vmem:[%s1795_s5 + $0x8] sm:$0xff] }
  0x34   :  { %v138_v1 = vsel %vm137_vm0, %v133_v0, 0.0  ;;  %v141_v3 = vsel %vm137_vm0, %v134_v2, 0.0 }
  0x35   :  { %139 = vadd.xlane.f32.xlu0 %v138_v1 }
  0x36   :  { %66 = vsyncpa [#allocation3], 0  ;;  %v1779_v4 = vmov 32.0   ;;  %v202_v21 = vld [vmem:[%s1825_s29 + $0x18] sm:$0xff]  ;;  %v201_v22 = vld [vmem:[%s1825_s29 + $0x10] sm:$0xff]  ;;  %s1780_s0 = smov 80  }
  0x37   :  { %1653 = vrcp.f32 %v1779_v4  ;;  %225 = vmatpush.msra.mxu0 %v202_v21  ;;  %v200_v23 = vld [vmem:[%s1825_s29 + $0x8] sm:$0xff]  ;;  %v199_v24 = vld [vmem:[%s1825_s29] sm:$0xff]  ;;  %s1781_s5 = smov 96   ;;  %vm239_vm8 = vcmask 130048   ;;  %vm301_vm9 = vcmask 64512   ;;  %s1785_s29 = smov 16  }
  0x38   :  { %v1634_v39 = vld [vmem:[%s1805_s13] ss:$0 sm:$0xff]  ;;  %s1782_s13 = smov 112   ;;  %s2275_s15 = sld [smem:[#allocation16_spill]] }
  0x39   :  { %226 = vmatpush.msra.mxu0 %v201_v22  ;;  %v1635_v43 = vld [vmem:[%s1810_s17] ss:$0 sm:$0xff]  ;;  %s1784_s17 = smov 48   ;;  %s2276_s16 = sld [smem:[#allocation17_spill]] }
  0x3a   :  { %v1636_v53 = vld [vmem:[%s1830_s3] ss:$0 sm:$0xff]  ;;  %s2266_s3 = sld [smem:[#allocation9_spill]]  ;;  %s1786_s22 = smov [#allocation2]  }
  0x3b   :  { %227 = vmatpush.msra.mxu0 %v200_v23  ;;  %s2277_s18 = sld [smem:[#allocation5_spill]]  ;;  %s1501_s23 = sshll.u32 %s1945_s25, 4  ;;  %s1502_s23 = int_to_ptr.hbm [resolvable:$true] %s1501_s23 }
  0x3c   :  { %s1739_s28 = scalar_lea.hbm %s1945_s25, 2 }
  0x3d   :  { %142 = vadd.xlane.f32.xlu0 %v141_v3  ;;  %v1654_v5 = vpop.eup %1653  ;;  %228 = vmatpush.msra.mxu0 %v199_v24  ;;  %v128_v3 = vld [vmem:[%s1800_s9 + $0x1] sm:$0x1] }
  0x3e   :  { %v145_v6 = vmul.f32 32.0, %v1654_v5  ;;  %vm149_vm1 = vweird.f32 %v1654_v5 }
  0x40   :  { %v146_v7 = vsub.f32 1.0, %v145_v6 }
  0x42   :  { %v147_v8 = vmul.f32 %v1654_v5, %v146_v7 }
  0x44   :  { %v148_v9 = vadd.f32 %v1654_v5, %v147_v8 }
  0x46   :  { %v1951_v10 = vsel %vm149_vm1, %v1654_v5, %v148_v9  ;;  %v130_v5 = vsub.f32 1.0, %v128_v3 }
  0x48   :  { %v132_v9 = vmul.f32 -10000.0, %v130_v5 }
  0xa8   :  { %v140_v11 = vpop.xlane.xlu0 %139 }
  0xa9   :  { %v151_v12 = vmul.f32 %v1951_v10, %v140_v11 }
  0xab   :  { %v153_v13 = vsub.f32 %v133_v0, %v151_v12  ;;  %v127_v0 = vld [vmem:[%s1800_s9] sm:$0x1]  ;;  %v2006_v12 = vperm.slane %v132_v9, 0  ;;  %s1783_s9 = smov 64  }
  0xac   :  { %v129_v1 = vsub.f32 1.0, %v127_v0  ;;  %v520_v9 = vld [vmem:[%s1835_s8] sm:$0xff] }
  0xad   :  { %v155_v14 = vmul.f32 %v153_v13, %v153_v13 }
  0xaf   :  { %v157_v15 = vsel %vm137_vm0, %v155_v14, 0.0 }
  0xb0   :  { %158 = vadd.xlane.f32.xlu1 %v157_v15  ;;  %v143_v16 = vpop.xlane.xlu0 %142 }
  0xb1   :  { %v152_v17 = vmul.f32 %v1951_v10, %v143_v16 }
  0xb3   :  { %v154_v18 = vsub.f32 %v134_v2, %v152_v17  ;;  %v131_v2 = vmul.f32 -10000.0, %v129_v1 }
  0xb5   :  { %v156_v19 = vmul.f32 %v154_v18, %v154_v18  ;;  %v2002_v4 = vperm.slane %v131_v2, 0 }
  0xb7   :  { %v160_v20 = vsel %vm137_vm0, %v156_v19, 0.0 }
  0xb8   :  { %161 = vadd.xlane.f32.xlu1 %v160_v20 }
 0x123   :  { %v159_v25 = vpop.xlane.xlu1 %158 }
 0x124   :  { %v163_v26 = vmul.f32 %v159_v25, %v1951_v10 }
 0x126   :  { %v165_v27 = vadd.f32 1e-12, %v163_v26 }
 0x128   :  { %1655 = vrsqrt.f32 %v165_v27  ;;  %vm173_vm3 = vweird.f32 %v165_v27 }
 0x12b   :  { %v162_v28 = vpop.xlane.xlu1 %161 }
 0x12c   :  { %v164_v29 = vmul.f32 %v162_v28, %v1951_v10 }
 0x12e   :  { %v1656_v30 = vpop.eup %1655  ;;  %v166_v31 = vadd.f32 1e-12, %v164_v29 }
 0x12f   :  { %v168_v32 = vmul.f32 %v1656_v30, %v165_v27  ;;  %vm174_vm2 = vweird.f32 %v1656_v30 }
 0x130   :  { %1657 = vrsqrt.f32 %v166_v31  ;;  %vm175_vm4 = vmor %vm173_vm3, %vm174_vm2  ;;  %vm183_vm5 = vweird.f32 %v166_v31 }
 0x131   :  { %v169_v33 = vmul.f32 %v1656_v30, %v168_v32 }
 0x133   :  { %v170_v34 = vmul.f32 0.5, %v169_v33 }
 0x135   :  { %v171_v35 = vsub.f32 1.5, %v170_v34 }
 0x136   :  { %v1658_v36 = vpop.eup %1657 }
 0x137   :  { %v172_v37 = vmul.f32 %v1656_v30, %v171_v35  ;;  %v178_v38 = vmul.f32 %v1658_v36, %v166_v31  ;;  %vm184_vm6 = vweird.f32 %v1658_v36 }
 0x138   :  { %vm185_vm7 = vmor %vm183_vm5, %vm184_vm6 }
 0x139   :  { %v176_v40 = vsel %vm175_vm4, %v1656_v30, %v172_v37  ;;  %v179_v41 = vmul.f32 %v1658_v36, %v178_v38 }
 0x13a   :  { %v187_v42 = vmul.f32 %v176_v40, %v153_v13 }
 0x13b   :  { %v180_v44 = vmul.f32 0.5, %v179_v41 }
 0x13c   :  { %v192_v45 = vmul.f32 %v1634_v39, %v187_v42 }
 0x13d   :  { %v181_v46 = vsub.f32 1.5, %v180_v44 }
 0x13e   :  { %v1965_v47 = vadd.f32 %v1635_v43, %v192_v45 }
 0x13f   :  { %v182_v48 = vmul.f32 %v1658_v36, %v181_v46 }
 0x140   :  { %1540 = vmatmul.msk.f32.vlgmr.msra.gmra.mxu0 %vm137_vm0, %v1965_v47 }
 0x141   :  { %v186_v49 = vsel %vm185_vm7, %v1658_v36, %v182_v48 }
 0x142   :  { %v188_v50 = vmul.f32 %v186_v49, %v154_v18 }
 0x144   :  { %v193_v51 = vmul.f32 %v1634_v39, %v188_v50 }
 0x146   :  { %v1969_v52 = vadd.f32 %v1635_v43, %v193_v51 }
 0x148   :  { %1541 = vmatmul.msk.f32.gmra.mxu0 %vm137_vm0, %v1969_v52 }
 0x1bd   :  { %v230_v54 = vpop.f32.mrf.mxu0 }
 0x1be   :  { %v1974_v55 = vadd.f32 %v1636_v53, %v230_v54 }
 0x1c0   :  { %378 = vrot.lane.b32.xlu0 %v1974_v55, %s1780_s0  ;;  %237 = vrot.lane.b32.xlu2 %v1974_v55, %s1781_s5 }
 0x1c1   :  { %376 = vrot.lane.b32.xlu1 %v1974_v55, %s1782_s13 }
 0x1c5   :  { %v233_v56 = vpop.f32.mrf.mxu0 }
 0x1c6   :  { %v1982_v57 = vadd.f32 %v1636_v53, %v233_v56 }
 0x1c8   :  { %265 = vrot.lane.b32.xlu2 %v1982_v57, %s1781_s5  ;;  %v1619_v25 = vpack.i.bf16 %v1982_v57, %v1974_v55 }
 0x1d0   :  { %406 = vrot.lane.b32.xlu2 %v1982_v57, %s1780_s0 }
 0x1d8   :  { %404 = vrot.lane.b32.xlu2 %v1982_v57, %s1782_s13 }
 0x21a   :  { %v238_v58 = vpop.permute.xlu2 %237 }
 0x21b   :  { %1542 = vmatpush.xpose.msk.msra.mxu2 %vm239_vm8, %v238_v58 }
 0x21e   :  { %1543 = vmatmul.msk.f32.vlgmr.msra.gmra.mxu2 %vm239_vm8, %v1974_v55 }
 0x222   :  { %v266_v59 = vpop.permute.xlu2 %265 }
 0x223   :  { %1544 = vmatpush.xpose.msk.msrb.mxu2 %vm239_vm8, %v266_v59 }
 0x226   :  { %1545 = vmatmul.msk.f32.vlgmr.msrb.gmra.mxu2 %vm239_vm8, %v1982_v57 }
 0x22a   :  { %v407_v60 = vpop.permute.xlu2 %406 }
 0x22b   :  { %1550 = vmatpush.xpose.msk.msra.mxu2 %vm239_vm8, %v407_v60 }
 0x232   :  { %v405_v61 = vpop.permute.xlu2 %404  ;;  %v379_v62 = vpop.permute.xlu0 %378 }
 0x233   :  { %1548 = vmatpush.xpose.msk.msra.mxu1 %vm239_vm8, %v379_v62  ;;  %1551 = vmatmul.msk.f32.vlgmr.msra.gmra.mxu2 %vm239_vm8, %v405_v61  ;;  %v377_v63 = vpop.permute.xlu1 %376 }
 0x236   :  { %1549 = vmatmul.msk.f32.vlgmr.msra.gmra.mxu1 %vm239_vm8, %v377_v63 }
 0x2a1   :  { %v261_v6 = vpop.f32.mrf.mxu2 }
 0x2a2   :  { %v291_v7 = vmul.f32 0.25, %v261_v6  ;;  %v523_v6 = vld [vmem:[%s1835_s8 + $0x18] sm:$0xff] }
 0x2a3   :  { %546 = vmatpush.msrb.mxu2 %v523_v6 }
 0x2a4   :  { %v299_v8 = vadd.f32 %v2002_v4, %v291_v7  ;;  %v522_v7 = vld [vmem:[%s1835_s8 + $0x10] sm:$0xff] }
 0x2a5   :  { %547 = vmatpush.msrb.mxu2 %v522_v7 }
 0x2a6   :  { %v302_v11 = vsel %vm301_vm9, %v299_v8, -inf }
 0x2a7   :  { %303 = vmax.xlane.f32.xlu2 %v302_v11 }
 0x2a9   :  { %v288_v13 = vpop.f32.mrf.mxu2 }
 0x2aa   :  { %v292_v14 = vmul.f32 0.25, %v288_v13 }
 0x2ac   :  { %v300_v15 = vadd.f32 %v2006_v12, %v292_v14 }
 0x2ae   :  { %v305_v16 = vsel %vm301_vm9, %v300_v15, -inf }
 0x2af   :  { %306 = vmax.xlane.f32.xlu0 %v305_v16  ;;  %v1637_v16 = vld [vmem:[%s1840_s14] ss:$0 sm:$0xff]  ;;  %s2268_s14 = sld [smem:[#allocation8_spill]] }
 0x2b3   :  { %v401_v17 = vpop.f32.mrf.mxu1 }
 0x2b4   :  { %v432_v18 = vmul.f32 0.25, %v401_v17 }
 0x2b6   :  { %v429_v19 = vpop.f32.mrf.mxu2  ;;  %v434_v20 = vadd.f32 %v432_v18, %v2002_v4 }
 0x2b7   :  { %v433_v21 = vmul.f32 0.25, %v429_v19 }
 0x2b8   :  { %v436_v22 = vsel %vm301_vm9, %v434_v20, -inf }
 0x2b9   :  { %437 = vmax.xlane.f32.xlu1 %v436_v22  ;;  %v435_v23 = vadd.f32 %v433_v21, %v2006_v12 }
 0x2bb   :  { %v439_v24 = vsel %vm301_vm9, %v435_v23, -inf }
 0x2bc   :  { %440 = vmax.xlane.f32.xlu2 %v439_v24 }
 0x2d2   :  { %1620 = vrot.lane.b32.xlu1 %v1619_v25, %s1783_s9 }
 0x31a   :  { %v304_v29 = vpop.xlane.xlu2 %303 }
 0x31b   :  { %v308_v34 = vsub.f32 %v299_v8, %v304_v29  ;;  %v521_v8 = vld [vmem:[%s1835_s8 + $0x8] sm:$0xff]  ;;  %s2267_s8 = sld [smem:[#allocation7_spill]] }
 0x31c   :  { %548 = vmatpush.msrb.mxu2 %v521_v8 }
 0x31d   :  { %v310_v36 = vmul.f32 1.442695, %v308_v34  ;;  %v617_v34 = vld [vmem:[%s1855_s30 + $0x10] sm:$0xff] }
 0x31e   :  { %549 = vmatpush.msrb.mxu2 %v520_v9 }
 0x322   :  { %v307_v26 = vpop.xlane.xlu0 %306 }
 0x323   :  { %v309_v27 = vsub.f32 %v300_v15, %v307_v26 }
 0x325   :  { %v312_v28 = vmul.f32 1.442695, %v309_v27 }
 0x327   :  { %1659 = vpow2.f32 %v312_v28 }
 0x32c   :  { %v438_v30 = vpop.xlane.xlu1 %437 }
 0x32d   :  { %v1660_v31 = vpop.eup %1659  ;;  %v442_v32 = vsub.f32 %v434_v20, %v438_v30 }
 0x32e   :  { %v317_v33 = vsel %vm301_vm9, %v1660_v31, 0.0 }
 0x32f   :  { %v444_v35 = vmul.f32 1.442695, %v442_v32  ;;  %318 = vadd.xlane.f32.xlu2 %v317_v33  ;;  %v441_v37 = vpop.xlane.xlu2 %440  ;;  %v618_v33 = vld [vmem:[%s1855_s30 + $0x18] sm:$0xff] }
 0x330   :  { %v443_v39 = vsub.f32 %v435_v23, %v441_v37  ;;  %641 = vmatpush.msrb.mxu0 %v618_v33 }
 0x331   :  { %1661 = vpow2.f32 %v444_v35  ;;  %v616_v35 = vld [vmem:[%s1855_s30 + $0x8] sm:$0xff] }
 0x332   :  { %1663 = vpow2.f32 %v310_v36  ;;  %v446_v41 = vmul.f32 1.442695, %v443_v39  ;;  %642 = vmatpush.msrb.mxu0 %v617_v34  ;;  %v615_v36 = vld [vmem:[%s1855_s30] sm:$0xff]  ;;  %s2271_s30 = sld [smem:[#allocation12_spill]] }
 0x334   :  { %1665 = vpow2.f32 %v446_v41  ;;  %643 = vmatpush.msrb.mxu0 %v616_v35 }
 0x336   :  { %644 = vmatpush.msrb.mxu0 %v615_v36 }
 0x337   :  { %v1662_v38 = vpop.eup %1661 }
 0x338   :  { %v448_v40 = vsel %vm301_vm9, %v1662_v38, 0.0  ;;  %v1664_v42 = vpop.eup %1663 }
 0x339   :  { %449 = vadd.xlane.f32.xlu0 %v448_v40  ;;  %v314_v43 = vsel %vm301_vm9, %v1664_v42, 0.0 }
 0x33a   :  { %v1666_v45 = vpop.eup %1665 }
 0x33b   :  { %v451_v49 = vsel %vm301_vm9, %v1666_v45, 0.0 }
 0x341   :  { %315 = vadd.xlane.f32.xlu0 %v314_v43 }
 0x344   :  { %v1621_v44 = vpop.permute.xlu1 %1620 }
 0x345   :  { %v1622_v46 = vunpack.i.l.bf16 %v1621_v44  ;;  %v1623_v48 = vunpack.i.h.bf16 %v1621_v44 }
 0x347   :  { %345 = vmatpush.msra.mxu3 %v1622_v46  ;;  %458 = vrot.lane.b32.xlu2 %v1974_v55, %s1784_s17 }
 0x349   :  { %371 = vmatpush.msrb.mxu3 %v1623_v48  ;;  %452 = vadd.xlane.f32.xlu0 %v451_v49 }
 0x35d   :  { %484 = vrot.lane.b32.xlu0 %v1982_v57, %s1784_s17 }
 0x3a2   :  { %v319_v51 = vpop.xlane.xlu2 %318 }
 0x3aa   :  { %v459_v58 = vpop.permute.xlu2 %458 }
 0x3ac   :  { %v450_v50 = vpop.xlane.xlu0 %449 }
 0x3b4   :  { %v316_v53 = vpop.xlane.xlu0 %315 }
 0x3b5   :  { %1667 = vrcp.f32 %v316_v53  ;;  %v1638_v53 = vld [vmem:[%s1845_s19] ss:$0 sm:$0xff]  ;;  %s2269_s19 = sld [smem:[#allocation10_spill]] }
 0x3b6   :  { %1669 = vrcp.f32 %v319_v51 }
 0x3b7   :  { %1671 = vrcp.f32 %v450_v50 }
 0x3bb   :  { %v1668_v54 = vpop.eup %1667 }
 0x3bc   :  { %v322_v56 = vmul.f32 %v1668_v54, %v1664_v42  ;;  %v1670_v59 = vpop.eup %1669  ;;  %v453_v55 = vpop.xlane.xlu0 %452 }
 0x3bd   :  { %v323_v60 = vmul.f32 %v1670_v59, %v1660_v31  ;;  %1673 = vrcp.f32 %v453_v55  ;;  %v1672_v57 = vpop.eup %1671  ;;  %v1639_v59 = vld [vmem:[%s1850_s24] ss:$0 sm:$0xff]  ;;  %s2270_s24 = sld [smem:[#allocation11_spill]] }
 0x3be   :  { %1546 = vmatmul.msk.f32.vlgmr.msra.gmra.mxu3 %vm301_vm9, %v322_v56  ;;  %v456_v62 = vmul.f32 %v1672_v57, %v1662_v38 }
 0x3bf   :  { %479 = vmatpush.msra.mxu3 %v459_v58 }
 0x3c3   :  { %v1674_v61 = vpop.eup %1673 }
 0x3c4   :  { %v457_v0 = vmul.f32 %v1674_v61, %v1666_v45 }
 0x3c6   :  { %1547 = vmatmul.msk.f32.vlgmr.msrb.gmra.mxu3 %vm301_vm9, %v323_v60 }
 0x3ce   :  { %1552 = vmatmul.msk.f32.vlgmr.msra.gmra.mxu3 %vm301_vm9, %v456_v62 }
 0x3cf   :  { %v485_v63 = vpop.permute.xlu0 %484 }
 0x3d0   :  { %505 = vmatpush.msrb.mxu1 %v485_v63 }
 0x3d1   :  { %1553 = vmatmul.msk.f32.vlgmr.msrb.gmra.mxu1 %vm301_vm9, %v457_v0 }
 0x441   :  { %v347_v1 = vpop.f32.mrf.mxu3 }
 0x449   :  { %v373_v2 = vpop.f32.mrf.mxu3 }
 0x44e   :  { %v507_v3 = vpop.f32.mrf.mxu1 }
 0x44f   :  { %514 = vrot.lane.b32.xlu2 %v507_v3, %s1785_s29  ;;  %v1640_v3 = vld [vmem:[%s1860_s6] ss:$0 sm:$0xff]  ;;  %s2272_s6 = sld [smem:[#allocation15_spill]] }
 0x451   :  { %v481_v5 = vpop.f32.mrf.mxu3 }
 0x452   :  { %512 = vrot.lane.b32.xlu1 %v481_v5, %s1785_s29 }
 0x4a9   :  { %v515_v14 = vpop.permute.xlu2 %514 }
 0x4aa   :  { %v519_v15 = vsel %vm239_vm8, %v373_v2, %v515_v14 }
 0x4c4   :  { %v513_v11 = vpop.permute.xlu1 %512 }
 0x4c5   :  { %v518_v13 = vsel %vm239_vm8, %v347_v1, %v513_v11 }
 0x4c6   :  { %1554 = vmatmul.msk.f32.vlgmr.msrb.gmra.mxu2 %vm137_vm0, %v518_v13 }
 0x4ce   :  { %1555 = vmatmul.msk.f32.gmra.mxu2 %vm137_vm0, %v519_v15  ;;  %v739_v15 = vld [vmem:[%s1865_s12 + $0x38] sm:$0xff] }
 0x4cf   :  { %759 = vmatpush.msrb.mxu3 %v739_v15 }
 0x549   :  { %v551_v17 = vpop.f32.mrf.mxu2 }
 0x54a   :  { %v552_v18 = vadd.f32 %v1637_v16, %v551_v17  ;;  %v738_v17 = vld [vmem:[%s1865_s12 + $0x30] sm:$0xff] }
 0x54b   :  { %760 = vmatpush.msrb.mxu3 %v738_v17 }
 0x54c   :  { %v557_v19 = vadd.f32 %v552_v18, %v1965_v47 }
 0x54e   :  { %v561_v20 = vsel %vm137_vm0, %v557_v19, 0.0 }
 0x54f   :  { %562 = vadd.xlane.f32.xlu1 %v561_v20 }
 0x551   :  { %v554_v21 = vpop.f32.mrf.mxu2 }
 0x552   :  { %v555_v22 = vadd.f32 %v1637_v16, %v554_v21 }
 0x554   :  { %v558_v23 = vadd.f32 %v555_v22, %v1969_v52  ;;  %v736_v22 = vld [vmem:[%s1865_s12 + $0x20] sm:$0xff] }
 0x556   :  { %v564_v24 = vsel %vm137_vm0, %v558_v23, 0.0 }
 0x557   :  { %565 = vadd.xlane.f32.xlu2 %v564_v24 }
 0x5c2   :  { %v563_v25 = vpop.xlane.xlu1 %562 }
 0x5c3   :  { %v567_v26 = vmul.f32 %v563_v25, %v1951_v10  ;;  %v735_v25 = vld [vmem:[%s1865_s12 + $0x18] sm:$0xff] }
 0x5c5   :  { %v569_v27 = vsub.f32 %v557_v19, %v567_v26  ;;  %v737_v19 = vld [vmem:[%s1865_s12 + $0x28] sm:$0xff] }
 0x5c6   :  { %761 = vmatpush.msrb.mxu3 %v737_v19 }
 0x5c7   :  { %v571_v28 = vmul.f32 %v569_v27, %v569_v27 }
 0x5c8   :  { %762 = vmatpush.msrb.mxu3 %v736_v22 }
 0x5c9   :  { %v573_v47 = vsel %vm137_vm0, %v571_v28, 0.0  ;;  %v734_v28 = vld [vmem:[%s1865_s12 + $0x10] sm:$0xff] }
 0x5ca   :  { %574 = vadd.xlane.f32.xlu0 %v573_v47  ;;  %v566_v29 = vpop.xlane.xlu2 %565  ;;  %763 = vmatpush.msrb.mxu3 %v735_v25 }
 0x5cb   :  { %v568_v30 = vmul.f32 %v566_v29, %v1951_v10 }
 0x5cc   :  { %764 = vmatpush.msrb.mxu3 %v734_v28 }
 0x5cd   :  { %v570_v31 = vsub.f32 %v558_v23, %v568_v30  ;;  %v733_v30 = vld [vmem:[%s1865_s12 + $0x8] sm:$0xff] }
 0x5ce   :  { %765 = vmatpush.msrb.mxu3 %v733_v30 }
 0x5cf   :  { %v572_v32 = vmul.f32 %v570_v31, %v570_v31 }
 0x5d1   :  { %v576_v52 = vsel %vm137_vm0, %v572_v32, 0.0 }
 0x5d2   :  { %577 = vadd.xlane.f32.xlu1 %v576_v52 }
 0x63d   :  { %v575_v37 = vpop.xlane.xlu0 %574 }
 0x63e   :  { %v579_v38 = vmul.f32 %v575_v37, %v1951_v10 }
 0x640   :  { %v581_v39 = vadd.f32 1e-12, %v579_v38 }
 0x642   :  { %1675 = vrsqrt.f32 %v581_v39  ;;  %vm589_vm11 = vweird.f32 %v581_v39 }
 0x645   :  { %v578_v40 = vpop.xlane.xlu1 %577 }
 0x646   :  { %v580_v41 = vmul.f32 %v578_v40, %v1951_v10 }
 0x648   :  { %v1676_v42 = vpop.eup %1675  ;;  %v582_v43 = vadd.f32 1e-12, %v580_v41 }
 0x649   :  { %v584_v44 = vmul.f32 %v1676_v42, %v581_v39  ;;  %vm590_vm10 = vweird.f32 %v1676_v42 }
 0x64a   :  { %1677 = vrsqrt.f32 %v582_v43  ;;  %vm591_vm12 = vmor %vm589_vm11, %vm590_vm10  ;;  %vm599_vm14 = vweird.f32 %v582_v43 }
 0x64b   :  { %v585_v45 = vmul.f32 %v1676_v42, %v584_v44 }
 0x64d   :  { %v586_v46 = vmul.f32 0.5, %v585_v45 }
 0x64f   :  { %v587_v48 = vsub.f32 1.5, %v586_v46 }
 0x650   :  { %v1678_v49 = vpop.eup %1677 }
 0x651   :  { %v588_v50 = vmul.f32 %v1676_v42, %v587_v48  ;;  %v594_v51 = vmul.f32 %v1678_v49, %v582_v43  ;;  %vm600_vm13 = vweird.f32 %v1678_v49 }
 0x652   :  { %vm601_vm15 = vmor %vm599_vm14, %vm600_vm13 }
 0x653   :  { %v592_v54 = vsel %vm591_vm12, %v1676_v42, %v588_v50  ;;  %v595_v56 = vmul.f32 %v1678_v49, %v594_v51  ;;  %vm744_vm12 = vcmask 523264  }
 0x654   :  { %v603_v58 = vmul.f32 %v592_v54, %v569_v27 }
 0x655   :  { %v596_v55 = vmul.f32 0.5, %v595_v56 }
 0x656   :  { %v608_v60 = vmul.f32 %v1638_v53, %v603_v58 }
 0x657   :  { %v597_v57 = vsub.f32 1.5, %v596_v55 }
 0x658   :  { %v2056_v61 = vadd.f32 %v1639_v59, %v608_v60 }
 0x659   :  { %v598_v62 = vmul.f32 %v1678_v49, %v597_v57 }
 0x65a   :  { %1556 = vmatmul.msk.f32.vlgmr.msrb.gmra.mxu0 %vm137_vm0, %v2056_v61 }
 0x65b   :  { %v602_v63 = vsel %vm601_vm15, %v1678_v49, %v598_v62 }
 0x65c   :  { %v604_v0 = vmul.f32 %v602_v63, %v570_v31  ;;  %v732_v31 = vld [vmem:[%s1865_s12] sm:$0xff]  ;;  %s2273_s12 = sld [smem:[#allocation13_spill]] }
 0x65d   :  { %766 = vmatpush.msrb.mxu3 %v732_v31 }
 0x65e   :  { %v609_v1 = vmul.f32 %v1638_v53, %v604_v0 }
 0x660   :  { %v2060_v2 = vadd.f32 %v1639_v59, %v609_v1 }
 0x662   :  { %1557 = vmatmul.msk.f32.gmra.mxu0 %vm137_vm0, %v2060_v2 }
 0x6d7   :  { %v646_v5 = vpop.f32.mrf.mxu0 }
 0x6d8   :  { %v2065_v6 = vadd.f32 %v1640_v3, %v646_v5 }
 0x6da   :  { %v2068_v7 = vmul.f32 0.70710677, %v2065_v6 }
 0x6dc   :  { %v656_v8 = vand.u32 2147483647, %v2068_v7  ;;  %vm722_vm11 = vcmp.lt.f32.partialorder %v2068_v7, 0.0 }
 0x6de   :  { %v658_v9 = vmul.f32 0.3275911, %v656_v8  ;;  %v710_v36 = vsub.f32 0.0, %v656_v8 }
 0x6df   :  { %v649_v11 = vpop.f32.mrf.mxu0 }
 0x6e0   :  { %v660_v13 = vadd.f32 1.0, %v658_v9  ;;  %v2071_v14 = vadd.f32 %v1640_v3, %v649_v11  ;;  %v712_v42 = vmul.f32 %v710_v36, %v656_v8 }
 0x6e2   :  { %1679 = vrcp.f32 %v660_v13  ;;  %v2075_v16 = vmul.f32 0.70710677, %v2071_v14  ;;  %v673_v27 = vand.u32 2147483648, %v660_v13  ;;  %v671_v29 = vand.u32 2147483647, %v660_v13 }
 0x6e3   :  { %vm667_vm2 = vweird.f32 %v660_v13  ;;  %v714_v50 = vmul.f32 1.442695, %v712_v42  ;;  %v653_v7 = vmul.f32 0.5, %v2071_v14 }
 0x6e4   :  { %v657_v18 = vand.u32 2147483647, %v2075_v16  ;;  %v674_v52 = vor.u32 1.1754944e-38, %v673_v27  ;;  %vm672_vm4 = vcmp.eq.f32.partialorder %v671_v29, 8.507059e+37  ;;  %vm723_vm13 = vcmp.lt.f32.partialorder %v2075_v16, 0.0 }
 0x6e6   :  { %v659_v20 = vmul.f32 0.3275911, %v657_v18  ;;  %v711_v54 = vsub.f32 0.0, %v657_v18 }
 0x6e8   :  { %v1680_v21 = vpop.eup %1679  ;;  %v661_v24 = vadd.f32 1.0, %v659_v20  ;;  %v713_v57 = vmul.f32 %v711_v54, %v657_v18 }
 0x6e9   :  { %v663_v23 = vmul.f32 %v1680_v21, %v660_v13  ;;  %vm668_vm1 = vweird.f32 %v1680_v21 }
 0x6ea   :  { %1681 = vrcp.f32 %v661_v24  ;;  %vm669_vm3 = vmor %vm667_vm2, %vm668_vm1  ;;  %v688_v41 = vand.u32 2147483648, %v661_v24  ;;  %v686_v44 = vand.u32 2147483647, %v661_v24  ;;  %vm682_vm6 = vweird.f32 %v661_v24 }
 0x6eb   :  { %v664_v26 = vsub.f32 1.0, %v663_v23  ;;  %1683 = vpow2.f32 %v714_v50  ;;  %v716_v3 = vmul.f32 1.442695, %v713_v57 }
 0x6ec   :  { %v689_v49 = vor.u32 1.1754944e-38, %v688_v41  ;;  %vm687_vm10 = vcmp.eq.f32.partialorder %v686_v44, 8.507059e+37  ;;  %v834_v44 = vld [vmem:[%s2266_s3 + $0x10] sm:$0xff] }
 0x6ed   :  { %v665_v47 = vmul.f32 %v1680_v21, %v664_v26  ;;  %1685 = vpow2.f32 %v716_v3 }
 0x6ef   :  { %v666_v32 = vadd.f32 %v1680_v21, %v665_v47 }
 0x6f0   :  { %v1682_v33 = vpop.eup %1681 }
 0x6f1   :  { %v670_v34 = vsel %vm669_vm3, %v1680_v21, %v666_v32  ;;  %v678_v37 = vmul.f32 %v1682_v33, %v661_v24  ;;  %vm683_vm5 = vweird.f32 %v1682_v33  ;;  %v1684_v5 = vpop.eup %1683  ;;  %v652_v21 = vmul.f32 0.5, %v2065_v6  ;;  %v1641_v6 = vld [vmem:[%s1870_s20] ss:$0 sm:$0xff]  ;;  %s2274_s20 = sld [smem:[#allocation14_spill]] }
 0x6f2   :  { %v675_v35 = vsel %vm672_vm4, %v674_v52, %v670_v34  ;;  %vm684_vm7 = vmor %vm682_vm6, %vm683_vm5 }
 0x6f3   :  { %v692_v38 = vmul.f32 1.0614054, %v675_v35  ;;  %v679_v39 = vsub.f32 1.0, %v678_v37  ;;  %v1686_v23 = vpop.eup %1685 }
 0x6f5   :  { %v694_v40 = vadd.f32 -1.4531521, %v692_v38  ;;  %v680_v43 = vmul.f32 %v1682_v33, %v679_v39 }
 0x6f7   :  { %v696_v45 = vmul.f32 %v694_v40, %v675_v35  ;;  %v681_v46 = vadd.f32 %v1682_v33, %v680_v43  ;;  %v835_v43 = vld [vmem:[%s2266_s3 + $0x18] sm:$0xff] }
 0x6f8   :  { %858 = vmatpush.msra.mxu1 %v835_v43 }
 0x6f9   :  { %v698_v48 = vadd.f32 1.4214138, %v696_v45  ;;  %v685_v51 = vsel %vm684_vm7, %v1682_v33, %v681_v46  ;;  %v833_v45 = vld [vmem:[%s2266_s3 + $0x8] sm:$0xff]  ;;  %v832_v46 = vld [vmem:[%s2266_s3] sm:$0xff] }
 0x6fa   :  { %v690_v56 = vsel %vm687_vm10, %v689_v49, %v685_v51  ;;  %859 = vmatpush.msra.mxu1 %v834_v44 }
 0x6fb   :  { %v700_v53 = vmul.f32 %v698_v48, %v675_v35  ;;  %v693_v58 = vmul.f32 1.0614054, %v690_v56 }
 0x6fc   :  { %860 = vmatpush.msra.mxu1 %v833_v45 }
 0x6fd   :  { %v702_v59 = vadd.f32 -0.28449672, %v700_v53  ;;  %v695_v55 = vadd.f32 -1.4531521, %v693_v58 }
 0x6fe   :  { %861 = vmatpush.msra.mxu1 %v832_v46 }
 0x6ff   :  { %v704_v60 = vmul.f32 %v702_v59, %v675_v35  ;;  %v697_v62 = vmul.f32 %v695_v55, %v690_v56 }
 0x701   :  { %v706_v63 = vadd.f32 0.2548296, %v704_v60  ;;  %v699_v0 = vadd.f32 1.4214138, %v697_v62 }
 0x703   :  { %v708_v1 = vmul.f32 %v706_v63, %v675_v35  ;;  %v701_v8 = vmul.f32 %v699_v0, %v690_v56  ;;  %v1642_v63 = vld [vmem:[%s2267_s8] ss:$0 sm:$0xff] }
 0x705   :  { %v718_v9 = vmul.f32 %v1684_v5, %v708_v1  ;;  %v703_v11 = vadd.f32 -0.28449672, %v701_v8  ;;  %v1643_v8 = vld [vmem:[%s2268_s14] ss:$0 sm:$0xff] }
 0x707   :  { %v720_v13 = vsub.f32 1.0, %v718_v9  ;;  %v705_v15 = vmul.f32 %v703_v11, %v690_v56 }
 0x709   :  { %v724_v17 = vsub.f32 0.0, %v720_v13  ;;  %v707_v19 = vadd.f32 0.2548296, %v705_v15 }
 0x70b   :  { %v726_v20 = vsel %vm722_vm11, %v724_v17, %v720_v13  ;;  %v709_v22 = vmul.f32 %v707_v19, %v690_v56 }
 0x70c   :  { %v728_v18 = vadd.f32 1.0, %v726_v20 }
 0x70d   :  { %v719_v25 = vmul.f32 %v1686_v23, %v709_v22  ;;  %v1644_v22 = vld [vmem:[%s2269_s19] ss:$0 sm:$0xff] }
 0x70e   :  { %v730_v24 = vmul.f32 %v728_v18, %v652_v21 }
 0x70f   :  { %v721_v26 = vsub.f32 1.0, %v719_v25 }
 0x710   :  { %1558 = vmatmul.msk.f32.vlgmr.msrb.gmra.mxu3 %vm744_vm12, %v730_v24 }
 0x711   :  { %v725_v27 = vsub.f32 0.0, %v721_v26 }
 0x713   :  { %v727_v28 = vsel %vm723_vm13, %v725_v27, %v721_v26 }
 0x714   :  { %v729_v47 = vadd.f32 1.0, %v727_v28 }
 0x716   :  { %v731_v29 = vmul.f32 %v729_v47, %v653_v7 }
 0x718   :  { %1559 = vmatmul.msk.f32.gmra.mxu3 %vm744_vm12, %v731_v29 }
 0x793   :  { %v768_v30 = vpop.f32.mrf.mxu3 }
 0x794   :  { %v769_v31 = vadd.f32 %v1641_v6, %v768_v30 }
 0x796   :  { %v774_v32 = vadd.f32 %v769_v31, %v2056_v61 }
 0x798   :  { %v778_v52 = vsel %vm137_vm0, %v774_v32, 0.0 }
 0x799   :  { %779 = vadd.xlane.f32.xlu2 %v778_v52 }
 0x79b   :  { %v771_v33 = vpop.f32.mrf.mxu3 }
 0x79c   :  { %v772_v34 = vadd.f32 %v1641_v6, %v771_v33 }
 0x79e   :  { %v775_v16 = vadd.f32 %v772_v34, %v2060_v2 }
 0x7a0   :  { %v781_v35 = vsel %vm137_vm0, %v775_v16, 0.0 }
 0x7a1   :  { %782 = vadd.xlane.f32.xlu0 %v781_v35 }
 0x80c   :  { %v780_v14 = vpop.xlane.xlu2 %779 }
 0x80d   :  { %v784_v36 = vmul.f32 %v780_v14, %v1951_v10 }
 0x80f   :  { %v786_v37 = vsub.f32 %v774_v32, %v784_v36 }
 0x811   :  { %v788_v38 = vmul.f32 %v786_v37, %v786_v37 }
 0x813   :  { %v790_v61 = vsel %vm137_vm0, %v788_v38, 0.0 }
 0x814   :  { %791 = vadd.xlane.f32.xlu1 %v790_v61  ;;  %v783_v39 = vpop.xlane.xlu0 %782 }
 0x815   :  { %v785_v40 = vmul.f32 %v783_v39, %v1951_v10 }
 0x817   :  { %v787_v41 = vsub.f32 %v775_v16, %v785_v40 }
 0x819   :  { %v789_v42 = vmul.f32 %v787_v41, %v787_v41 }
 0x81b   :  { %v793_v2 = vsel %vm137_vm0, %v789_v42, 0.0 }
 0x81c   :  { %794 = vadd.xlane.f32.xlu2 %v793_v2 }
 0x887   :  { %v792_v48 = vpop.xlane.xlu1 %791 }
 0x888   :  { %v796_v49 = vmul.f32 %v792_v48, %v1951_v10 }
 0x88a   :  { %v798_v50 = vadd.f32 1e-12, %v796_v49 }
 0x88c   :  { %1687 = vrsqrt.f32 %v798_v50  ;;  %vm806_vm15 = vweird.f32 %v798_v50 }
 0x88f   :  { %v795_v51 = vpop.xlane.xlu2 %794 }
 0x890   :  { %v797_v53 = vmul.f32 %v795_v51, %v1951_v10 }
 0x892   :  { %v1688_v54 = vpop.eup %1687  ;;  %v799_v58 = vadd.f32 1e-12, %v797_v53 }
 0x893   :  { %v801_v56 = vmul.f32 %v1688_v54, %v798_v50  ;;  %vm807_vm14 = vweird.f32 %v1688_v54 }
 0x894   :  { %1689 = vrsqrt.f32 %v799_v58  ;;  %vm808_vm1 = vmor %vm806_vm15, %vm807_vm14  ;;  %vm816_vm3 = vweird.f32 %v799_v58 }
 0x895   :  { %v802_v59 = vmul.f32 %v1688_v54, %v801_v56 }
 0x897   :  { %v803_v55 = vmul.f32 0.5, %v802_v59 }
 0x899   :  { %v804_v60 = vsub.f32 1.5, %v803_v55 }
 0x89a   :  { %v1690_v57 = vpop.eup %1689 }
 0x89b   :  { %v805_v62 = vmul.f32 %v1688_v54, %v804_v60  ;;  %v811_v0 = vmul.f32 %v1690_v57, %v799_v58  ;;  %vm817_vm2 = vweird.f32 %v1690_v57 }
 0x89c   :  { %vm818_vm4 = vmor %vm816_vm3, %vm817_vm2 }
 0x89d   :  { %v809_v1 = vsel %vm808_vm1, %v1688_v54, %v805_v62  ;;  %v812_v5 = vmul.f32 %v1690_v57, %v811_v0 }
 0x89e   :  { %v820_v3 = vmul.f32 %v809_v1, %v786_v37 }
 0x89f   :  { %v813_v11 = vmul.f32 0.5, %v812_v5 }
 0x8a0   :  { %v825_v9 = vmul.f32 %v1642_v63, %v820_v3 }
 0x8a1   :  { %v814_v13 = vsub.f32 1.5, %v813_v11 }
 0x8a2   :  { %v2108_v15 = vadd.f32 %v1643_v8, %v825_v9 }
 0x8a3   :  { %v815_v17 = vmul.f32 %v1690_v57, %v814_v13 }
 0x8a4   :  { %1560 = vmatmul.msk.f32.vlgmr.msra.gmra.mxu1 %vm137_vm0, %v2108_v15 }
 0x8a5   :  { %v819_v19 = vsel %vm818_vm4, %v1690_v57, %v815_v17 }
 0x8a6   :  { %v821_v20 = vmul.f32 %v819_v19, %v787_v41 }
 0x8a8   :  { %v826_v21 = vmul.f32 %v1642_v63, %v821_v20 }
 0x8aa   :  { %v2112_v18 = vadd.f32 %v1643_v8, %v826_v21 }
 0x8ac   :  { %1561 = vmatmul.msk.f32.gmra.mxu1 %vm137_vm0, %v2112_v18 }
 0x921   :  { %v863_v23 = vpop.f32.mrf.mxu1 }
 0x922   :  { %v2117_v24 = vadd.f32 %v1644_v22, %v863_v23 }
 0x924   :  { %870 = vrot.lane.b32.xlu0 %v2117_v24, %s1781_s5 }
 0x929   :  { %v866_v25 = vpop.f32.mrf.mxu1 }
 0x92a   :  { %v2121_v26 = vadd.f32 %v1644_v22, %v866_v25 }
 0x92c   :  { %1029 = vrot.lane.b32.xlu0 %v2121_v26, %s1782_s13  ;;  %1031 = vrot.lane.b32.xlu2 %v2121_v26, %s1780_s0  ;;  %v1624_v62 = vpack.i.bf16 %v2121_v26, %v2117_v24 }
 0x92d   :  { %897 = vrot.lane.b32.xlu1 %v2121_v26, %s1781_s5 }
 0x934   :  { %1001 = vrot.lane.b32.xlu0 %v2117_v24, %s1782_s13 }
 0x935   :  { %1003 = vrot.lane.b32.xlu1 %v2117_v24, %s1780_s0 }
 0x986   :  { %v1032_v27 = vpop.permute.xlu2 %1031 }
 0x987   :  { %1570 = vmatpush.xpose.msk.msra.mxu3 %vm239_vm8, %v1032_v27  ;;  %v1148_v27 = vld [vmem:[%s2270_s24 + $0x18] sm:$0xff] }
 0x996   :  { %v871_v28 = vpop.permute.xlu0 %870 }
 0x997   :  { %1562 = vmatpush.xpose.msk.msra.mxu2 %vm239_vm8, %v871_v28  ;;  %v1147_v28 = vld [vmem:[%s2270_s24 + $0x10] sm:$0xff] }
 0x99a   :  { %1563 = vmatmul.msk.f32.vlgmr.msra.gmra.mxu2 %vm239_vm8, %v2117_v24 }
 0x99e   :  { %v1030_v7 = vpop.permute.xlu0 %1029 }
 0x99f   :  { %v898_v47 = vpop.permute.xlu1 %897  ;;  %1571 = vmatmul.msk.f32.vlgmr.msra.gmra.mxu3 %vm239_vm8, %v1030_v7  ;;  %v1146_v7 = vld [vmem:[%s2270_s24 + $0x8] sm:$0xff] }
 0x9a0   :  { %1564 = vmatpush.xpose.msk.msra.mxu0 %vm239_vm8, %v898_v47 }
 0x9a3   :  { %1565 = vmatmul.msk.f32.vlgmr.msra.gmra.mxu0 %vm239_vm8, %v2121_v26 }
 0x9a6   :  { %v1002_v6 = vpop.permute.xlu0 %1001 }
 0x9a7   :  { %v1004_v29 = vpop.permute.xlu1 %1003 }
 0x9a8   :  { %1568 = vmatpush.xpose.msk.msrb.mxu0 %vm239_vm8, %v1004_v29 }
 0x9ab   :  { %1569 = vmatmul.msk.f32.vlgmr.msrb.gmra.mxu0 %vm239_vm8, %v1002_v6 }
 0x9ac   :  { %1171 = vmatpush.msra.mxu0 %v1148_v27  ;;  %v1648_v27 = vld [vmem:[%s2275_s15] ss:$0 sm:$0xff] }
 0x9ae   :  { %1172 = vmatpush.msra.mxu0 %v1147_v28 }
 0x9b0   :  { %1173 = vmatpush.msra.mxu0 %v1146_v7 }
 0xa1d   :  { %v893_v30 = vpop.f32.mrf.mxu2 }
 0xa1e   :  { %v923_v31 = vmul.f32 0.25, %v893_v30 }
 0xa20   :  { %v925_v32 = vadd.f32 %v923_v31, %v2002_v4  ;;  %v920_v52 = vpop.f32.mrf.mxu0  ;;  %v1145_v31 = vld [vmem:[%s2270_s24] sm:$0xff] }
 0xa21   :  { %v924_v33 = vmul.f32 0.25, %v920_v52  ;;  %1174 = vmatpush.msra.mxu0 %v1145_v31 }
 0xa22   :  { %v927_v34 = vsel %vm301_vm9, %v925_v32, -inf  ;;  %v1054_v16 = vpop.f32.mrf.mxu3 }
 0xa23   :  { %928 = vmax.xlane.f32.xlu2 %v927_v34  ;;  %v1058_v35 = vmul.f32 0.25, %v1054_v16  ;;  %v926_v14 = vadd.f32 %v924_v33, %v2006_v12  ;;  %v1645_v16 = vld [vmem:[%s2271_s30] ss:$0 sm:$0xff] }
 0xa25   :  { %v930_v36 = vsel %vm301_vm9, %v926_v14, -inf  ;;  %v1060_v37 = vadd.f32 %v1058_v35, %v2006_v12 }
 0xa26   :  { %931 = vmax.xlane.f32.xlu1 %v930_v36 }
 0xa27   :  { %v1064_v39 = vsel %vm301_vm9, %v1060_v37, -inf }
 0xa28   :  { %v1026_v38 = vpop.f32.mrf.mxu0 }
 0xa29   :  { %v1057_v61 = vmul.f32 0.25, %v1026_v38 }
 0xa2b   :  { %1065 = vmax.xlane.f32.xlu2 %v1064_v39  ;;  %v1059_v40 = vadd.f32 %v1057_v61, %v2002_v4 }
 0xa2d   :  { %v1061_v41 = vsel %vm301_vm9, %v1059_v40, -inf }
 0xa2e   :  { %1062 = vmax.xlane.f32.xlu0 %v1061_v41 }
 0xa96   :  { %v929_v42 = vpop.xlane.xlu2 %928 }
 0xa97   :  { %v933_v2 = vsub.f32 %v925_v32, %v929_v42 }
 0xa99   :  { %v935_v43 = vmul.f32 1.442695, %v933_v2  ;;  %v932_v44 = vpop.xlane.xlu1 %931 }
 0xa9a   :  { %v934_v45 = vsub.f32 %v926_v14, %v932_v44 }
 0xa9b   :  { %1691 = vpow2.f32 %v935_v43 }
 0xa9c   :  { %v937_v46 = vmul.f32 1.442695, %v934_v45 }
 0xa9e   :  { %v1066_v48 = vpop.xlane.xlu2 %1065  ;;  %1693 = vpow2.f32 %v937_v46 }
 0xa9f   :  { %v1068_v12 = vsub.f32 %v1060_v37, %v1066_v48 }
 0xaa1   :  { %v1692_v49 = vpop.eup %1691  ;;  %v1071_v50 = vmul.f32 1.442695, %v1068_v12  ;;  %v1063_v51 = vpop.xlane.xlu0 %1062  ;;  %v1243_v12 = vld [vmem:[%s2272_s6 + $0x18] sm:$0xff] }
 0xaa2   :  { %v939_v53 = vsel %vm301_vm9, %v1692_v49, 0.0  ;;  %v1067_v54 = vsub.f32 %v1059_v40, %v1063_v51  ;;  %1266 = vmatpush.msrb.mxu3 %v1243_v12  ;;  %v1240_v51 = vld [vmem:[%s2272_s6] sm:$0xff] }
 0xaa3   :  { %940 = vadd.xlane.f32.xlu1 %v939_v53  ;;  %1695 = vpow2.f32 %v1071_v50  ;;  %v1241_v50 = vld [vmem:[%s2272_s6 + $0x8] sm:$0xff] }
 0xaa4   :  { %v1694_v4 = vpop.eup %1693  ;;  %v1069_v56 = vmul.f32 1.442695, %v1067_v54 }
 0xaa5   :  { %v942_v58 = vsel %vm301_vm9, %v1694_v4, 0.0 }
 0xaa6   :  { %1697 = vpow2.f32 %v1069_v56  ;;  %943 = vadd.xlane.f32.xlu0 %v942_v58 }
 0xaa9   :  { %v1696_v59 = vpop.eup %1695 }
 0xaaa   :  { %v1076_v57 = vsel %vm301_vm9, %v1696_v59, 0.0 }
 0xaac   :  { %v1698_v55 = vpop.eup %1697 }
 0xaad   :  { %v1073_v60 = vsel %vm301_vm9, %v1698_v55, 0.0 }
 0xaae   :  { %1074 = vadd.xlane.f32.xlu2 %v1073_v60  ;;  %1077 = vadd.xlane.f32.xlu0 %v1076_v57 }
 0xabc   :  { %1625 = vrot.lane.b32.xlu1 %v1624_v62, %s1783_s9 }
 0xac6   :  { %1630 = vrot.lane.b32.xlu2 %v1624_v62, %s1784_s17 }
 0xb16   :  { %v941_v0 = vpop.xlane.xlu1 %940 }
 0xb17   :  { %1699 = vrcp.f32 %v941_v0 }
 0xb19   :  { %v944_v63 = vpop.xlane.xlu0 %943 }
 0xb1a   :  { %1701 = vrcp.f32 %v944_v63 }
 0xb1d   :  { %v1700_v3 = vpop.eup %1699 }
 0xb1e   :  { %v947_v19 = vmul.f32 %v1700_v3, %v1692_v49  ;;  %v1242_v49 = vld [vmem:[%s2272_s6 + $0x10] sm:$0xff] }
 0xb1f   :  { %1267 = vmatpush.msrb.mxu3 %v1242_v49 }
 0xb20   :  { %v1702_v8 = vpop.eup %1701 }
 0xb21   :  { %v1075_v1 = vpop.xlane.xlu2 %1074  ;;  %v1078_v5 = vpop.xlane.xlu0 %1077  ;;  %v948_v20 = vmul.f32 %v1702_v8, %v1694_v4  ;;  %1268 = vmatpush.msrb.mxu3 %v1241_v50 }
 0xb22   :  { %1703 = vrcp.f32 %v1075_v1 }
 0xb23   :  { %1705 = vrcp.f32 %v1078_v5  ;;  %1269 = vmatpush.msrb.mxu3 %v1240_v51  ;;  %v1646_v5 = vld [vmem:[%s2273_s12] ss:$0 sm:$0xff] }
 0xb28   :  { %v1704_v23 = vpop.eup %1703 }
 0xb29   :  { %v1631_v9 = vpop.permute.xlu2 %1630  ;;  %v1706_v24 = vpop.eup %1705  ;;  %v1081_v25 = vmul.f32 %v1704_v23, %v1698_v55 }
 0xb2a   :  { %v1633_v21 = vunpack.i.h.bf16 %v1631_v9  ;;  %v1632_v22 = vunpack.i.l.bf16 %v1631_v9  ;;  %v1082_v26 = vmul.f32 %v1706_v24, %v1696_v59 }
 0xb2e   :  { %v1626_v11 = vpop.permute.xlu1 %1625 }
 0xb2f   :  { %v1628_v13 = vunpack.i.h.bf16 %v1626_v11  ;;  %v1627_v17 = vunpack.i.l.bf16 %v1626_v11 }
 0xb31   :  { %970 = vmatpush.msrb.mxu1 %v1627_v17  ;;  %996 = vmatpush.msrb.mxu2 %v1628_v13  ;;  %v1647_v13 = vld [vmem:[%s2274_s20] ss:$0 sm:$0xff] }
 0xb32   :  { %1566 = vmatmul.msk.f32.vlgmr.msrb.gmra.mxu1 %vm301_vm9, %v947_v19  ;;  %1567 = vmatmul.msk.f32.vlgmr.msrb.gmra.mxu2 %vm301_vm9, %v948_v20 }
 0xb33   :  { %1104 = vmatpush.msra.mxu1 %v1632_v22  ;;  %1130 = vmatpush.msra.mxu2 %v1633_v21 }
 0xb3a   :  { %1572 = vmatmul.msk.f32.vlgmr.msra.gmra.mxu1 %vm301_vm9, %v1081_v25  ;;  %1573 = vmatmul.msk.f32.vlgmr.msra.gmra.mxu2 %vm301_vm9, %v1082_v26 }
 0xbaf   :  { %v972_v47 = vpop.f32.mrf.mxu1 }
 0xbb5   :  { %v998_v29 = vpop.f32.mrf.mxu2 }
 0xbb7   :  { %v1106_v6 = vpop.f32.mrf.mxu1 }
 0xbb8   :  { %1137 = vrot.lane.b32.xlu0 %v1106_v6, %s1785_s29 }
 0xbbd   :  { %v1132_v30 = vpop.f32.mrf.mxu2 }
 0xbbe   :  { %1139 = vrot.lane.b32.xlu1 %v1132_v30, %s1785_s29 }
 0xc2a   :  { %v1138_v32 = vpop.permute.xlu0 %1137 }
 0xc2b   :  { %v1143_v52 = vsel %vm239_vm8, %v972_v47, %v1138_v32 }
 0xc2c   :  { %1574 = vmatmul.msk.f32.vlgmr.msra.gmra.mxu0 %vm137_vm0, %v1143_v52 }
 0xc30   :  { %v1140_v33 = vpop.permute.xlu1 %1139 }
 0xc31   :  { %v1144_v34 = vsel %vm239_vm8, %v998_v29, %v1140_v33  ;;  %v1364_v33 = vld [vmem:[%s2276_s16 + $0x38] sm:$0xff] }
 0xc32   :  { %1383 = vmatpush.msrb.mxu1 %v1364_v33 }
 0xc34   :  { %1575 = vmatmul.msk.f32.gmra.mxu0 %vm137_vm0, %v1144_v34 }
 0xca9   :  { %v1176_v35 = vpop.f32.mrf.mxu0 }
 0xcaa   :  { %v1177_v14 = vadd.f32 %v1645_v16, %v1176_v35 }
 0xcac   :  { %v1182_v36 = vadd.f32 %v1177_v14, %v2108_v15  ;;  %v1362_v14 = vld [vmem:[%s2276_s16 + $0x28] sm:$0xff] }
 0xcae   :  { %v1186_v37 = vsel %vm137_vm0, %v1182_v36, 0.0 }
 0xcaf   :  { %1187 = vadd.xlane.f32.xlu2 %v1186_v37 }
 0xcb1   :  { %v1179_v38 = vpop.f32.mrf.mxu0 }
 0xcb2   :  { %v1180_v61 = vadd.f32 %v1645_v16, %v1179_v38  ;;  %v1363_v16 = vld [vmem:[%s2276_s16 + $0x30] sm:$0xff] }
 0xcb3   :  { %1384 = vmatpush.msrb.mxu1 %v1363_v16 }
 0xcb4   :  { %v1183_v39 = vadd.f32 %v1180_v61, %v2112_v18  ;;  %v1361_v61 = vld [vmem:[%s2276_s16 + $0x20] sm:$0xff] }
 0xcb5   :  { %1385 = vmatpush.msrb.mxu1 %v1362_v14 }
 0xcb6   :  { %v1189_v40 = vsel %vm137_vm0, %v1183_v39, 0.0 }
 0xcb7   :  { %1190 = vadd.xlane.f32.xlu0 %v1189_v40  ;;  %1386 = vmatpush.msrb.mxu1 %v1361_v61  ;;  %v1360_v40 = vld [vmem:[%s2276_s16 + $0x18] sm:$0xff] }
 0xcb9   :  { %1387 = vmatpush.msrb.mxu1 %v1360_v40 }
 0xd22   :  { %v1188_v41 = vpop.xlane.xlu2 %1187 }
 0xd23   :  { %v1192_v42 = vmul.f32 %v1188_v41, %v1951_v10 }
 0xd25   :  { %v1194_v2 = vsub.f32 %v1182_v36, %v1192_v42 }
 0xd27   :  { %v1196_v43 = vmul.f32 %v1194_v2, %v1194_v2 }
 0xd29   :  { %v1198_v15 = vsel %vm137_vm0, %v1196_v43, 0.0  ;;  %v1359_v43 = vld [vmem:[%s2276_s16 + $0x10] sm:$0xff] }
 0xd2a   :  { %v1191_v44 = vpop.xlane.xlu0 %1190  ;;  %1199 = vadd.xlane.f32.xlu1 %v1198_v15  ;;  %1388 = vmatpush.msrb.mxu1 %v1359_v43  ;;  %v1358_v15 = vld [vmem:[%s2276_s16 + $0x8] sm:$0xff] }
 0xd2b   :  { %v1193_v45 = vmul.f32 %v1191_v44, %v1951_v10 }
 0xd2c   :  { %1389 = vmatpush.msrb.mxu1 %v1358_v15 }
 0xd2d   :  { %v1195_v46 = vsub.f32 %v1183_v39, %v1193_v45  ;;  %v1357_v45 = vld [vmem:[%s2276_s16] sm:$0xff] }
 0xd2e   :  { %1390 = vmatpush.msrb.mxu1 %v1357_v45 }
 0xd2f   :  { %v1197_v48 = vmul.f32 %v1195_v46, %v1195_v46 }
 0xd31   :  { %v1201_v18 = vsel %vm137_vm0, %v1197_v48, 0.0 }
 0xd32   :  { %1202 = vadd.xlane.f32.xlu2 %v1201_v18 }
 0xd9d   :  { %v1200_v53 = vpop.xlane.xlu1 %1199 }
 0xd9e   :  { %v1204_v54 = vmul.f32 %v1200_v53, %v1951_v10 }
 0xda0   :  { %v1206_v4 = vadd.f32 1e-12, %v1204_v54 }
 0xda2   :  { %1707 = vrsqrt.f32 %v1206_v4  ;;  %vm1214_vm9 = vweird.f32 %v1206_v4 }
 0xda5   :  { %v1203_v56 = vpop.xlane.xlu2 %1202 }
 0xda6   :  { %v1205_v58 = vmul.f32 %v1203_v56, %v1951_v10 }
 0xda8   :  { %v1708_v59 = vpop.eup %1707  ;;  %v1207_v55 = vadd.f32 1e-12, %v1205_v58 }
 0xda9   :  { %v1209_v60 = vmul.f32 %v1708_v59, %v1206_v4  ;;  %vm1215_vm8 = vweird.f32 %v1708_v59 }
 0xdaa   :  { %1709 = vrsqrt.f32 %v1207_v55  ;;  %vm1216_vm5 = vmor %vm1214_vm9, %vm1215_vm8  ;;  %vm1224_vm7 = vweird.f32 %v1207_v55 }
 0xdab   :  { %v1210_v57 = vmul.f32 %v1708_v59, %v1209_v60 }
 0xdad   :  { %v1211_v62 = vmul.f32 0.5, %v1210_v57 }
 0xdaf   :  { %v1212_v63 = vsub.f32 1.5, %v1211_v62 }
 0xdb0   :  { %v1710_v0 = vpop.eup %1709 }
 0xdb1   :  { %v1213_v1 = vmul.f32 %v1708_v59, %v1212_v63  ;;  %v1219_v3 = vmul.f32 %v1710_v0, %v1207_v55  ;;  %vm1225_vm6 = vweird.f32 %v1710_v0 }
 0xdb2   :  { %vm1226_vm10 = vmor %vm1224_vm7, %vm1225_vm6 }
 0xdb3   :  { %v1217_v8 = vsel %vm1216_vm5, %v1708_v59, %v1213_v1  ;;  %v1220_v9 = vmul.f32 %v1710_v0, %v1219_v3 }
 0xdb4   :  { %v1228_v11 = vmul.f32 %v1217_v8, %v1194_v2 }
 0xdb5   :  { %v1221_v17 = vmul.f32 0.5, %v1220_v9 }
 0xdb6   :  { %v1233_v19 = vmul.f32 %v1646_v5, %v1228_v11 }
 0xdb7   :  { %v1222_v20 = vsub.f32 1.5, %v1221_v17 }
 0xdb8   :  { %v2190_v21 = vadd.f32 %v1647_v13, %v1233_v19 }
 0xdb9   :  { %v1223_v22 = vmul.f32 %v1710_v0, %v1222_v20 }
 0xdba   :  { %1576 = vmatmul.msk.f32.vlgmr.msrb.gmra.mxu3 %vm137_vm0, %v2190_v21 }
 0xdbb   :  { %v1227_v23 = vsel %vm1226_vm10, %v1710_v0, %v1223_v22 }
 0xdbc   :  { %v1229_v24 = vmul.f32 %v1227_v23, %v1195_v46 }
 0xdbe   :  { %v1234_v25 = vmul.f32 %v1646_v5, %v1229_v24 }
 0xdc0   :  { %v2194_v26 = vadd.f32 %v1647_v13, %v1234_v25 }
 0xdc2   :  { %1577 = vmatmul.msk.f32.gmra.mxu3 %vm137_vm0, %v2194_v26 }
 0xe3d   :  { %v1271_v28 = vpop.f32.mrf.mxu3 }
 0xe3e   :  { %v2199_v7 = vadd.f32 %v1648_v27, %v1271_v28 }
 0xe40   :  { %v2202_v47 = vmul.f32 0.70710677, %v2199_v7 }
 0xe42   :  { %v1281_v29 = vand.u32 2147483647, %v2202_v47  ;;  %vm1347_vm8 = vcmp.lt.f32.partialorder %v2202_v47, 0.0 }
 0xe44   :  { %v1283_v6 = vmul.f32 0.3275911, %v1281_v29  ;;  %v1335_v49 = vsub.f32 0.0, %v1281_v29 }
 0xe45   :  { %v1274_v30 = vpop.f32.mrf.mxu3 }
 0xe46   :  { %v1285_v31 = vadd.f32 1.0, %v1283_v6  ;;  %v2205_v32 = vadd.f32 %v1648_v27, %v1274_v30  ;;  %v1337_v56 = vmul.f32 %v1335_v49, %v1281_v29 }
 0xe48   :  { %1711 = vrcp.f32 %v1285_v31  ;;  %v2208_v52 = vmul.f32 0.70710677, %v2205_v32  ;;  %v1298_v41 = vand.u32 2147483648, %v1285_v31  ;;  %v1296_v2 = vand.u32 2147483647, %v1285_v31 }
 0xe49   :  { %vm1292_vm13 = vweird.f32 %v1285_v31  ;;  %v1339_v63 = vmul.f32 1.442695, %v1337_v56 }
 0xe4a   :  { %v1282_v34 = vand.u32 2147483647, %v2208_v52  ;;  %v1299_v46 = vor.u32 1.1754944e-38, %v1298_v41  ;;  %vm1297_vm15 = vcmp.eq.f32.partialorder %v1296_v2, 8.507059e+37  ;;  %vm1348_vm9 = vcmp.lt.f32.partialorder %v2208_v52, 0.0 }
 0xe4b   :  { %v1278_v41 = vmul.f32 0.5, %v2205_v32  ;;  %v1649_v2 = vld [vmem:[%s1930_s21] ss:$0 sm:$0xff]  ;;  %s2278_s21 = sld [smem:[#allocation6_spill]] }
 0xe4c   :  { %v1284_v35 = vmul.f32 0.3275911, %v1282_v34  ;;  %v1336_v3 = vsub.f32 0.0, %v1282_v34 }
 0xe4e   :  { %v1712_v36 = vpop.eup %1711  ;;  %v1286_v38 = vadd.f32 1.0, %v1284_v35  ;;  %v1338_v17 = vmul.f32 %v1336_v3, %v1282_v34  ;;  %v1277_v34 = vmul.f32 0.5, %v2199_v7 }
 0xe4f   :  { %v1288_v37 = vmul.f32 %v1712_v36, %v1285_v31  ;;  %vm1293_vm11 = vweird.f32 %v1712_v36 }
 0xe50   :  { %1713 = vrcp.f32 %v1286_v38  ;;  %vm1294_vm14 = vmor %vm1292_vm13, %vm1293_vm11  ;;  %v1313_v4 = vand.u32 2147483648, %v1286_v38  ;;  %v1311_v59 = vand.u32 2147483647, %v1286_v38  ;;  %vm1307_vm2 = vweird.f32 %v1286_v38 }
 0xe51   :  { %v1289_v39 = vsub.f32 1.0, %v1288_v37  ;;  %1715 = vpow2.f32 %v1339_v63  ;;  %v1341_v24 = vmul.f32 1.442695, %v1338_v17  ;;  %vm1459_vm13 = vcmask 1040384  }
 0xe52   :  { %v1314_v62 = vor.u32 1.1754944e-38, %v1313_v4  ;;  %vm1312_vm4 = vcmp.eq.f32.partialorder %v1311_v59, 8.507059e+37  ;;  %v1463_v59 = vld [vmem:[%s2277_s18 + $0x10] sm:$0xff] }
 0xe53   :  { %v1290_v42 = vmul.f32 %v1712_v36, %v1289_v39  ;;  %1717 = vpow2.f32 %v1341_v24  ;;  %v1650_v24 = vld [vmem:[%s1935_s27] ss:$0 sm:$0xff]  ;;  %s1499_s27 = sshll.u32 %s1786_s22, 4  ;;  %s1500_s27 = int_to_ptr.vmem [resolvable:$true] %s1499_s27 }
 0xe55   :  { %v1291_v44 = vadd.f32 %v1712_v36, %v1290_v42 }
 0xe56   :  { %v1714_v48 = vpop.eup %1713 }
 0xe57   :  { %v1295_v18 = vsel %vm1294_vm14, %v1712_v36, %v1291_v44  ;;  %v1303_v50 = vmul.f32 %v1714_v48, %v1286_v38  ;;  %vm1308_vm1 = vweird.f32 %v1714_v48  ;;  %v1716_v25 = vpop.eup %1715  ;;  %vm1492_vm14 = vcmask 123904  }
 0xe58   :  { %v1300_v12 = vsel %vm1297_vm15, %v1299_v46, %v1295_v18  ;;  %vm1309_vm3 = vmor %vm1307_vm2, %vm1308_vm1 }
 0xe59   :  { %v1317_v51 = vmul.f32 1.0614054, %v1300_v12  ;;  %v1304_v53 = vsub.f32 1.0, %v1303_v50  ;;  %v1718_v36 = vpop.eup %1717 }
 0xe5b   :  { %v1319_v54 = vadd.f32 -1.4531521, %v1317_v51  ;;  %v1305_v58 = vmul.f32 %v1714_v48, %v1304_v53 }
 0xe5d   :  { %v1321_v55 = vmul.f32 %v1319_v54, %v1300_v12  ;;  %v1306_v60 = vadd.f32 %v1714_v48, %v1305_v58  ;;  %v1464_v58 = vld [vmem:[%s2277_s18 + $0x18] sm:$0xff] }
 0xe5e   :  { %1484 = vmatpush.msrb.mxu2 %v1464_v58 }
 0xe5f   :  { %v1323_v57 = vadd.f32 1.4214138, %v1321_v55  ;;  %v1310_v0 = vsel %vm1309_vm3, %v1714_v48, %v1306_v60  ;;  %v1462_v60 = vld [vmem:[%s2277_s18 + $0x8] sm:$0xff] }
 0xe60   :  { %v1315_v5 = vsel %vm1312_vm4, %v1314_v62, %v1310_v0  ;;  %1485 = vmatpush.msrb.mxu2 %v1463_v59 }
 0xe61   :  { %v1325_v1 = vmul.f32 %v1323_v57, %v1300_v12  ;;  %v1318_v8 = vmul.f32 1.0614054, %v1315_v5  ;;  %v1461_v57 = vld [vmem:[%s2277_s18] sm:$0xff] }
 0xe62   :  { %1486 = vmatpush.msrb.mxu2 %v1462_v60 }
 0xe63   :  { %v1327_v9 = vadd.f32 -0.28449672, %v1325_v1  ;;  %v1320_v11 = vadd.f32 -1.4531521, %v1318_v8 }
 0xe64   :  { %1487 = vmatpush.msrb.mxu2 %v1461_v57 }
 0xe65   :  { %v1329_v13 = vmul.f32 %v1327_v9, %v1300_v12  ;;  %v1322_v19 = vmul.f32 %v1320_v11, %v1315_v5 }
 0xe67   :  { %v1331_v20 = vadd.f32 0.2548296, %v1329_v13  ;;  %v1324_v22 = vadd.f32 1.4214138, %v1322_v19 }
 0xe69   :  { %v1333_v23 = vmul.f32 %v1331_v20, %v1300_v12  ;;  %v1326_v27 = vmul.f32 %v1324_v22, %v1315_v5 }
 0xe6b   :  { %v1343_v28 = vmul.f32 %v1716_v25, %v1333_v23  ;;  %v1328_v29 = vadd.f32 -0.28449672, %v1326_v27 }
 0xe6d   :  { %v1345_v6 = vsub.f32 1.0, %v1343_v28  ;;  %v1330_v30 = vmul.f32 %v1328_v29, %v1315_v5 }
 0xe6f   :  { %v1349_v31 = vsub.f32 0.0, %v1345_v6  ;;  %v1332_v33 = vadd.f32 0.2548296, %v1330_v30  ;;  %v1651_v30 = vld [vmem:[%s1940_s4] ss:$0 sm:$0xff]  ;;  %s1735_s4 = sshra.s32 %s1502_s23, 4  ;;  %s1736_s4 = int_to_ptr.hbm [resolvable:$true] %s1735_s4 }
 0xe70   :  { %s1737_s26 = scalar_lea.hbm %s1736_s4, 2  ;;  %p1740_p1 = scmp.lt.s32.totalorder %s1736_s4, %s1945_s25 }
 0xe71   :  { %v1351_v16 = vsel %vm1347_vm8, %v1349_v31, %v1345_v6  ;;  %v1334_v14 = vmul.f32 %v1332_v33, %v1315_v5  ;;  %p1738_p0 = scmp.ne.s32.totalorder %s1736_s4, %s1737_s26  ;;  %p1741_p2 = scmp.lt.s32.totalorder %s1739_s28, %s1737_s26 }
 0xe72   :  { %v1353_v35 = vadd.f32 1.0, %v1351_v16 }
 0xe73   :  { %v1344_v38 = vmul.f32 %v1718_v36, %v1334_v14  ;;  %p1742_p3 = por %p1741_p2, %p1740_p1 }
 0xe74   :  { %v1355_v37 = vmul.f32 %v1353_v35, %v1277_v34  ;;  %v1652_v35 = vld [vmem:[%s2278_s21] ss:$0 sm:$0xff] }
 0xe75   :  { %v1346_v61 = vsub.f32 1.0, %v1344_v38  ;;  %p1743_p4 = pnand %p1742_p3, %p1738_p0 }
 0xe76   :  { %1578 = vmatmul.msk.f32.vlgmr.msrb.gmra.mxu1 %vm744_vm12, %v1355_v37 }
 0xe77   :  { %v1350_v39 = vsub.f32 0.0, %v1346_v61 }
 0xe79   :  { %v1352_v40 = vsel %vm1348_vm9, %v1350_v39, %v1346_v61 }
 0xe7a   :  { %v1354_v47 = vadd.f32 1.0, %v1352_v40 }
 0xe7c   :  { %v1356_v42 = vmul.f32 %v1354_v47, %v1278_v41 }
 0xe7e   :  { %1579 = vmatmul.msk.f32.gmra.mxu1 %vm744_vm12, %v1356_v42 }
 0xef3   :  { %v1392_v7 = vpop.f32.mrf.mxu1 }
 0xef4   :  { %v1393_v43 = vadd.f32 %v1649_v2, %v1392_v7 }
 0xef6   :  { %v1398_v15 = vadd.f32 %v1393_v43, %v2190_v21 }
 0xef8   :  { %v1402_v44 = vsel %vm137_vm0, %v1398_v15, 0.0 }
 0xef9   :  { %1403 = vadd.xlane.f32.xlu1 %v1402_v44 }
 0xefb   :  { %v1395_v45 = vpop.f32.mrf.mxu1 }
 0xefc   :  { %v1396_v46 = vadd.f32 %v1649_v2, %v1395_v45 }
 0xefe   :  { %v1399_v48 = vadd.f32 %v1396_v46, %v2194_v26 }
 0xf00   :  { %v1405_v52 = vsel %vm137_vm0, %v1399_v48, 0.0 }
 0xf01   :  { %1406 = vadd.xlane.f32.xlu0 %v1405_v52 }
 0xf6c   :  { %v1404_v32 = vpop.xlane.xlu1 %1403 }
 0xf6d   :  { %v1408_v18 = vmul.f32 %v1404_v32, %v1951_v10 }
 0xf6f   :  { %v1410_v12 = vsub.f32 %v1398_v15, %v1408_v18 }
 0xf71   :  { %v1412_v49 = vmul.f32 %v1410_v12, %v1410_v12 }
 0xf73   :  { %v1414_v21 = vsel %vm137_vm0, %v1412_v49, 0.0 }
 0xf74   :  { %1415 = vadd.xlane.f32.xlu0 %v1414_v21  ;;  %v1407_v50 = vpop.xlane.xlu0 %1406 }
 0xf75   :  { %v1409_v51 = vmul.f32 %v1407_v50, %v1951_v10 }
 0xf77   :  { %v1411_v53 = vsub.f32 %v1399_v48, %v1409_v51 }
 0xf79   :  { %v1413_v26 = vmul.f32 %v1411_v53, %v1411_v53 }
 0xf7b   :  { %v1417_v54 = vsel %vm137_vm0, %v1413_v26, 0.0 }
 0xf7c   :  { %1418 = vadd.xlane.f32.xlu2 %v1417_v54 }
 0xfe7   :  { %v1416_v4 = vpop.xlane.xlu0 %1415 }
 0xfe8   :  { %v1420_v56 = vmul.f32 %v1416_v4, %v1951_v10 }
 0xfea   :  { %v1422_v55 = vadd.f32 1e-12, %v1420_v56 }
 0xfec   :  { %1719 = vrsqrt.f32 %v1422_v55  ;;  %vm1430_vm5 = vweird.f32 %v1422_v55 }
 0xfef   :  { %v1419_v62 = vpop.xlane.xlu2 %1418 }
 0xff0   :  { %v1421_v63 = vmul.f32 %v1419_v62, %v1951_v10 }
 0xff2   :  { %v1720_v0 = vpop.eup %1719  ;;  %v1423_v3 = vadd.f32 1e-12, %v1421_v63 }
 0xff3   :  { %v1425_v1 = vmul.f32 %v1720_v0, %v1422_v55  ;;  %vm1431_vm12 = vweird.f32 %v1720_v0 }
 0xff4   :  { %1721 = vrsqrt.f32 %v1423_v3  ;;  %vm1432_vm6 = vmor %vm1430_vm5, %vm1431_vm12  ;;  %vm1440_vm10 = vweird.f32 %v1423_v3 }
 0xff5   :  { %v1426_v5 = vmul.f32 %v1720_v0, %v1425_v1 }
 0xff7   :  { %v1427_v8 = vmul.f32 0.5, %v1426_v5 }
 0xff9   :  { %v1428_v9 = vsub.f32 1.5, %v1427_v8 }
 0xffa   :  { %v1722_v11 = vpop.eup %1721 }
 0xffb   :  { %v1435_v13 = vmul.f32 %v1722_v11, %v1423_v3  ;;  %v1429_v17 = vmul.f32 %v1720_v0, %v1428_v9  ;;  %vm1441_vm7 = vweird.f32 %v1722_v11 }
 0xffc   :  { %vm1442_vm11 = vmor %vm1440_vm10, %vm1441_vm7 }
 0xffd   :  { %v1436_v19 = vmul.f32 %v1722_v11, %v1435_v13  ;;  %v1433_v22 = vsel %vm1432_vm6, %v1720_v0, %v1429_v17 }
 0xffe   :  { %v1444_v25 = vmul.f32 %v1433_v22, %v1410_v12 }
 0xfff   :  { %v1437_v20 = vmul.f32 0.5, %v1436_v19 }
0x1000   :  { %v1449_v29 = vmul.f32 %v1650_v24, %v1444_v25 }
0x1001   :  { %v1438_v23 = vsub.f32 1.5, %v1437_v20 }
0x1002   :  { %v1454_v33 = vadd.f32 %v1651_v30, %v1449_v29 }
0x1003   :  { %v1439_v10 = vmul.f32 %v1722_v11, %v1438_v23 }
0x1005   :  { %v1443_v27 = vsel %vm1442_vm11, %v1722_v11, %v1439_v10 }
0x1006   :  { %v1445_v28 = vmul.f32 %v1443_v27, %v1411_v53 }
0x1008   :  { %v1450_v6 = vmul.f32 %v1650_v24, %v1445_v28 }
0x100a   :  { %v1455_v31 = vadd.f32 %v1651_v30, %v1450_v6 }
0x100c   :  { %v1457_v16 = vrot.slane %v1455_v31, 7 }
0x100e   :  { %v1460_v34 = vsel %vm1459_vm13, %v1454_v33, %v1457_v16 }
0x100f   :  { %1580 = vmatmul.msk.f32.vlgmr.msrb.gmra.mxu2 %vm137_vm0, %v1460_v34 }
0x1092   :  { %v1489_v14 = vpop.f32.mrf.mxu2 }
0x1093   :  { %v1490_v36 = vadd.f32 %v1652_v35, %v1489_v14 }
0x1095   :  { %1493 = vst.msk [vmem:[#allocation2] sm:$0x3] %vm1492_vm14, %v1490_v36 }
0x1096   :  { %1746 = shalt.err (!%p1743_p4)
}
0x1097   :  { %1504 = dma.vmem_to_hbm [thread:$0]  %s1500_s27, 32, %s1502_s23, [#allocation3]  }
0x1098   :  { %1747 = dma.done.wait [#allocation3], 32  }
0x1099   :  { %1748 = vsyncadd [#allocation3], 4294967264 }
0x109a   :  { %1509 = vsyncpa [#allocation3], 1 }

</bundles_post_ra>
